<compile_context>
chip_gen: v7x
topology: tpu7x:2x2x1
jax: 0.10.0
libtpu: 0.0.40
codegen_flags: <defaults>
</compile_context>

<pallas_src>
import math

import jax
import jax.numpy as jnp
import numpy as np
from jax.experimental import pallas as pl
from jax.experimental.pallas import tpu as pltpu

# ---------------- Hyperparameters (mirrors Autoencoder(__init__) defaults) ---
ENCODER_DIM = [64, 48, 32]   # last element == d_model (required by the module)
D_MODEL = 32
NHEAD = 2
DIM_FF = 128
NUM_LAYERS = 2
NUM = 8                      # number of samples ("num" == transformer seq len)

EPS_BN = 1e-5
EPS_LN = 1e-5

# ---- W_pack row offsets (weight matrices, each [K, <=128] zero-padded to 128 lanes)
W_EW1 = 0        # [64, 48]  encoder Linear1 (BN folded)
W_EW2 = 64       # [48, 32]  encoder Linear2
W_DW1 = 112      # [32, 48]  decoder Linear1 (BN folded)
W_DW2 = 144      # [48, 64]  decoder Linear2 (BN folded)
W_TL_BASE = 192  # transformer layers start here
W_TL_STRIDE = 224
W_INW_OFF, W_OW_OFF, W_FW1_OFF, W_FW2_OFF = 0, 32, 64, 96
W_ROWS = W_TL_BASE + NUM_LAYERS * W_TL_STRIDE   # 640

# ---- V_pack row indices (one bias / LN vector per row, dense)
V_EB1, V_EB2, V_DB1, V_DB2 = 0, 1, 2, 3
V_TL_BASE, V_TL_STRIDE = 4, 8
V_INB, V_OB, V_LN1G, V_LN1B, V_FB1, V_FB2, V_LN2G, V_LN2B = range(8)
V_ROWS_USED = V_TL_BASE + NUM_LAYERS * V_TL_STRIDE   # 20
V_ROWS = 24                                          # padded to sublane multiple


# ------------------------------- math helpers (traced inside the kernel) ----
def _layernorm(h, g, b):
    # Fused single-pass moments: mean(h) and mean(h*h) are independent XLU
    # reductions (var = E[h^2] - mu^2); rsqrt sits on the EUP slot.
    mu = jnp.mean(h, axis=-1, keepdims=True)
    ms = jnp.mean(h * h, axis=-1, keepdims=True)
    var = ms - mu * mu
    return (h - mu) * jax.lax.rsqrt(var + EPS_LN) * g + b


def _softmax_exact(h, axis):
    m = jnp.max(h, axis=axis, keepdims=True)
    e = jnp.exp(h - m)
    return e / jnp.sum(e, axis=axis, keepdims=True)


def _softmax_approx(h, axis):
    m = jnp.max(h, axis=axis, keepdims=True)
    e = jnp.exp(h - m)
    return e * pl.reciprocal(jnp.sum(e, axis=axis, keepdims=True), approx=True)


def _dot(a, b):
    # bf16 x bf16 on the MXU, f32 accumulation.  `b` is usually already bf16
    # (weight slab); astype is then a no-op.
    return jnp.dot(a.astype(jnp.bfloat16), b.astype(jnp.bfloat16),
                   preferred_element_type=jnp.float32)


# ------------------------------------------------------------ Pallas kernel -
def autoencoder_kernel(x_ref, w_ref, v_ref, out_ref):
    def W(r0, k, n):                       # weight block [k, n] at rows r0..r0+k (bf16)
        return w_ref[r0:r0 + k, 0:n]

    def V(row, n):                         # bias / LN vector [1, n] (f32)
        return v_ref[row:row + 1, 0:n]

    x = x_ref[...]
    num = x.shape[0]

    # ----- encoder: (Linear+BN folded) -> ReLU -> Linear -> Softmax(dim=1) ---
    h = jnp.maximum(_dot(x, W(W_EW1, ENCODER_DIM[0], ENCODER_DIM[1])) + V(V_EB1, ENCODER_DIM[1]), 0.0)
    z = _dot(h, W(W_EW2, ENCODER_DIM[1], ENCODER_DIM[2])) + V(V_EB2, ENCODER_DIM[2])
    latent = _softmax_exact(z, axis=1)     # user-visible output: exact divide

    # ----- transformer encoder (post-norm, relu FFN, eval mode) --------------
    # attention 1/sqrt(hd) scale is already folded into the Q part of inw/inb.
    y = latent
    hd = D_MODEL // NHEAD
    for layer in range(NUM_LAYERS):
        wb = W_TL_BASE + layer * W_TL_STRIDE
        vb = V_TL_BASE + layer * V_TL_STRIDE

        qkv = _dot(y, W(wb + W_INW_OFF, D_MODEL, 3 * D_MODEL)) + V(vb + V_INB, 3 * D_MODEL)
        q = qkv[:, 0:D_MODEL]
        k = qkv[:, D_MODEL:2 * D_MODEL]
        v = qkv[:, 2 * D_MODEL:3 * D_MODEL]
        kT = k.T                                            # one transpose per layer

        heads = []
        for hx in range(NHEAD):
            sl = slice(hx * hd, (hx + 1) * hd)
            s = _dot(q[:, sl], kT[sl, :])                   # [num, num]; K^T sliced on
            p = _softmax_approx(s, axis=-1)                 # 8-aligned sublane rows
            heads.append(_dot(p, v[:, sl]))                 # [num, hd]
        attn = jnp.concatenate(heads, axis=-1)              # [num, d_model]
        attn = _dot(attn, W(wb + W_OW_OFF, D_MODEL, D_MODEL)) + V(vb + V_OB, D_MODEL)

        y = _layernorm(y + attn, V(vb + V_LN1G, D_MODEL), V(vb + V_LN1B, D_MODEL))
        ff = jnp.maximum(_dot(y, W(wb + W_FW1_OFF, D_MODEL, DIM_FF)) + V(vb + V_FB1, DIM_FF), 0.0)
        ff = _dot(ff, W(wb + W_FW2_OFF, DIM_FF, D_MODEL)) + V(vb + V_FB2, D_MODEL)
        y = _layernorm(y + ff, V(vb + V_LN2G, D_MODEL), V(vb + V_LN2B, D_MODEL))

    # ----- decoder: (Linear+BN folded -> ReLU) x 2 ----------------------------
    h = jnp.maximum(_dot(y, W(W_DW1, D_MODEL, ENCODER_DIM[1])) + V(V_DB1, ENCODER_DIM[1]), 0.0)
    x_hat = jnp.maximum(_dot(h, W(W_DW2, ENCODER_DIM[1], ENCODER_DIM[0])) + V(V_DB2, ENCODER_DIM[0]), 0.0)

    # ----- single unmasked 128-lane store: latent | x_hat | zero pad ----------
    pad = jnp.zeros((num, 128 - D_MODEL - ENCODER_DIM[0]), dtype=jnp.float32)
    out_ref[...] = jnp.concatenate([latent, x_hat, pad], axis=-1)


# ------------------------------------------------ one-time parameter packing -
def _fold_bn(w, b, g, beta, m, v):
    """Fold eval-mode BatchNorm1d into the preceding Linear ([in,out] layout)."""
    s = g * jax.lax.rsqrt(v + EPS_BN)            # [1, out]
    return w * s, b * s + beta - m * s


def _pad_rc(a, rows, cols=128):
    r, c = a.shape
    return jnp.pad(a, ((0, rows - r), (0, cols - c)))


def pack_params(p):
    """Run ONCE at model-load time (not in the per-call forward path)."""
    # Fold BatchNorms (eval mode) into the adjacent Linear layers.
    ew1, eb1 = _fold_bn(p["ew1"], p["eb1"], p["ebn_g"], p["ebn_b"], p["ebn_m"], p["ebn_v"])
    dw1, db1 = _fold_bn(p["dw1"], p["db1"], p["dbn1_g"], p["dbn1_b"], p["dbn1_m"], p["dbn1_v"])
    dw2, db2 = _fold_bn(p["dw2"], p["db2"], p["dbn2_g"], p["dbn2_b"], p["dbn2_m"], p["dbn2_v"])

    # Fold the 1/sqrt(head_dim) attention scale into the Q columns of inw/inb.
    hd = D_MODEL // NHEAD
    scale = 1.0 / math.sqrt(hd)
    qscale = jnp.concatenate([jnp.full((D_MODEL,), scale, jnp.float32),
                              jnp.ones((2 * D_MODEL,), jnp.float32)])
    t_inw = p["t_inw"] * qscale                  # [L, 32, 96]
    t_inb = p["t_inb"] * qscale                  # [L, 1, 96]

    # ---- weight slab [W_ROWS, 128], bf16 (MXU-native, half the DMA bytes)
    blocks = [_pad_rc(ew1, 64), _pad_rc(p["ew2"], 48), _pad_rc(dw1, 32), _pad_rc(dw2, 48)]
    for l in range(NUM_LAYERS):
        blocks += [_pad_rc(t_inw[l], 32), _pad_rc(p["t_ow"][l], 32),
                   _pad_rc(p["t_fw1"][l], 32), _pad_rc(p["t_fw2"][l], 128)]
    w_pack = jnp.concatenate(blocks, axis=0).astype(jnp.bfloat16)
    assert w_pack.shape == (W_ROWS, 128)

    # ---- vector slab [V_ROWS, 128], f32, one vector per row (dense)
    rows = [_pad_rc(eb1, 1), _pad_rc(p["eb2"], 1), _pad_rc(db1, 1), _pad_rc(db2, 1)]
    for l in range(NUM_LAYERS):
        rows += [_pad_rc(t_inb[l], 1), _pad_rc(p["t_ob"][l], 1),
                 _pad_rc(p["t_ln1g"][l], 1), _pad_rc(p["t_ln1b"][l], 1),
                 _pad_rc(p["t_fb1"][l], 1), _pad_rc(p["t_fb2"][l], 1),
                 _pad_rc(p["t_ln2g"][l], 1), _pad_rc(p["t_ln2b"][l], 1)]
    v_pack = jnp.concatenate(rows, axis=0)
    v_pack = jnp.pad(v_pack, ((0, V_ROWS - V_ROWS_USED), (0, 0)))
    assert v_pack.shape == (V_ROWS, 128)
    return w_pack, v_pack


# -------------------------------------------------------- per-call forward --
@jax.jit
def autoencoder_forward(x, w_pack, v_pack):
    """Forward pass on pre-packed parameter slabs (packing is NOT in this path)."""
    num = x.shape[0]
    vmem = lambda: pl.BlockSpec(memory_space=pltpu.MemorySpace.VMEM)
    out = pl.pallas_call(
        autoencoder_kernel,
        out_shape=jax.ShapeDtypeStruct((num, 128), jnp.float32),
        in_specs=[vmem(), vmem(), vmem()],
        out_specs=vmem(),
    )(x, w_pack, v_pack)
    latent = out[:, :D_MODEL]
    x_hat = out[:, D_MODEL:D_MODEL + ENCODER_DIM[0]]
    return x_hat, latent


# ----------------------------------------------- deterministic parameters ---
def init_params(key):
    ki = iter(jax.random.split(key, 64))

    def w(shape, s=0.1):
        return s * jax.random.normal(next(ki), shape, dtype=jnp.float32)

    dd = list(reversed(ENCODER_DIM))
    p = {}
    # encoder
    p["ew1"] = w((ENCODER_DIM[0], ENCODER_DIM[1]))      # pre-transposed [in, out]
    p["eb1"] = w((1, ENCODER_DIM[1]))
    p["ebn_g"] = 1.0 + w((1, ENCODER_DIM[1]), 0.05)
    p["ebn_b"] = w((1, ENCODER_DIM[1]), 0.05)
    p["ebn_m"] = w((1, ENCODER_DIM[1]), 0.05)
    p["ebn_v"] = 1.0 + jnp.abs(w((1, ENCODER_DIM[1]), 0.05))
    p["ew2"] = w((ENCODER_DIM[1], ENCODER_DIM[2]))
    p["eb2"] = w((1, ENCODER_DIM[2]))
    # transformer encoder layers
    p["t_inw"] = w((NUM_LAYERS, D_MODEL, 3 * D_MODEL))
    p["t_inb"] = w((NUM_LAYERS, 1, 3 * D_MODEL))
    p["t_ow"] = w((NUM_LAYERS, D_MODEL, D_MODEL))
    p["t_ob"] = w((NUM_LAYERS, 1, D_MODEL))
    p["t_ln1g"] = 1.0 + w((NUM_LAYERS, 1, D_MODEL), 0.05)
    p["t_ln1b"] = w((NUM_LAYERS, 1, D_MODEL), 0.05)
    p["t_fw1"] = w((NUM_LAYERS, D_MODEL, DIM_FF))
    p["t_fb1"] = w((NUM_LAYERS, 1, DIM_FF))
    p["t_fw2"] = w((NUM_LAYERS, DIM_FF, D_MODEL))
    p["t_fb2"] = w((NUM_LAYERS, 1, D_MODEL))
    p["t_ln2g"] = 1.0 + w((NUM_LAYERS, 1, D_MODEL), 0.05)
    p["t_ln2b"] = w((NUM_LAYERS, 1, D_MODEL), 0.05)
    # decoder
    p["dw1"] = w((dd[0], dd[1]))
    p["db1"] = w((1, dd[1]))
    p["dbn1_g"] = 1.0 + w((1, dd[1]), 0.05)
    p["dbn1_b"] = w((1, dd[1]), 0.05)
    p["dbn1_m"] = w((1, dd[1]), 0.05)
    p["dbn1_v"] = 1.0 + jnp.abs(w((1, dd[1]), 0.05))
    p["dw2"] = w((dd[1], dd[2]))
    p["db2"] = w((1, dd[2]))
    p["dbn2_g"] = 1.0 + w((1, dd[2]), 0.05)
    p["dbn2_b"] = w((1, dd[2]), 0.05)
    p["dbn2_m"] = w((1, dd[2]), 0.05)
    p["dbn2_v"] = 1.0 + jnp.abs(w((1, dd[2]), 0.05))
    return p


# ------------------------------------------- pure-JAX reference (sanity) ----
# Uses the RAW (unfolded, f32) parameters, so it also validates the BN / scale
# folding, the parameter packing, and the bf16 matmul precision.
def _bn_eval(h, g, b, m, v):
    return (h - m) * jax.lax.rsqrt(v + EPS_BN) * g + b


def _ln_ref(h, g, b):
    mu = jnp.mean(h, axis=-1, keepdims=True)
    var = jnp.mean((h - mu) ** 2, axis=-1, keepdims=True)
    return (h - mu) * jax.lax.rsqrt(var + EPS_LN) * g + b


def reference_forward(x, p):
    h = x @ p["ew1"] + p["eb1"]
    h = _bn_eval(h, p["ebn_g"], p["ebn_b"], p["ebn_m"], p["ebn_v"])
    h = jnp.maximum(h, 0.0)
    z = h @ p["ew2"] + p["eb2"]
    latent = jax.nn.softmax(z, axis=1)

    y = latent
    hd = D_MODEL // NHEAD
    scale = 1.0 / math.sqrt(hd)
    for layer in range(NUM_LAYERS):
        qkv = y @ p["t_inw"][layer] + p["t_inb"][layer]
        q, k, v = qkv[:, :D_MODEL], qkv[:, D_MODEL:2 * D_MODEL], qkv[:, 2 * D_MODEL:]
        heads = []
        for hx in range(NHEAD):
            sl = slice(hx * hd, (hx + 1) * hd)
            s = (q[:, sl] @ k[:, sl].T) * scale
            heads.append(jax.nn.softmax(s, axis=-1) @ v[:, sl])
        attn = jnp.concatenate(heads, axis=-1) @ p["t_ow"][layer] + p["t_ob"][layer]
        y = _ln_ref(y + attn, p["t_ln1g"][layer], p["t_ln1b"][layer])
        ff = jnp.maximum(y @ p["t_fw1"][layer] + p["t_fb1"][layer], 0.0)
        ff = ff @ p["t_fw2"][layer] + p["t_fb2"][layer]
        y = _ln_ref(y + ff, p["t_ln2g"][layer], p["t_ln2b"][layer])

    h = y @ p["dw1"] + p["db1"]
    h = jnp.maximum(_bn_eval(h, p["dbn1_g"], p["dbn1_b"], p["dbn1_m"], p["dbn1_v"]), 0.0)
    h = h @ p["dw2"] + p["db2"]
    x_hat = jnp.maximum(_bn_eval(h, p["dbn2_g"], p["dbn2_b"], p["dbn2_m"], p["dbn2_v"]), 0.0)
    return x_hat, latent


# ------------------------------------------------------------------- main ---
if __name__ == "__main__":
    key = jax.random.PRNGKey(0)
    kx, kp = jax.random.split(key)
    x = jax.random.normal(kx, (NUM, ENCODER_DIM[0]), dtype=jnp.float32)
    params = init_params(kp)

    # Model-load-time packing (one-time; NOT in the per-call forward path).
    w_pack, v_pack = pack_params(params)
    w_pack, v_pack = jax.block_until_ready((w_pack, v_pack))

    x_hat, latent = autoencoder_forward(x, w_pack, v_pack)
    jax.block_until_ready((x_hat, latent))

    assert x_hat.shape == (NUM, ENCODER_DIM[0]) and latent.shape == (NUM, ENCODER_DIM[-1])

    # sanity check vs a plain-JAX f32 reference (bf16 MXU / approx recip differ slightly)
    ref_xhat, ref_latent = reference_forward(x, params)
    np.testing.assert_allclose(np.asarray(latent), np.asarray(ref_latent), rtol=5e-2, atol=5e-2)
    np.testing.assert_allclose(np.asarray(x_hat), np.asarray(ref_xhat), rtol=5e-2, atol=5e-2)

    print("KERNEL_OK")
</pallas_src>

<mosaic_0001>
module attributes {stable_mosaic.version = 11 : i64} {
  func.func @autoencoder_kernel(%arg0: memref<8x64xf32, #tpu.memory_space<vmem>>, %arg1: memref<640x128xbf16, #tpu.memory_space<vmem>>, %arg2: memref<24x128xf32, #tpu.memory_space<vmem>>, %arg3: memref<8x128xf32, #tpu.memory_space<vmem>>) attributes {dimension_semantics = [], scalar_prefetch = 0 : i64, scratch_operands = 0 : i64, tpu.core_type = #tpu.core_type<tc>} {
    %c0 = arith.constant 0 : index
    %c0_0 = arith.constant 0 : index
    %0 = vector.load %arg0[%c0, %c0_0] : memref<8x64xf32, #tpu.memory_space<vmem>>, vector<8x64xf32>
    %c0_1 = arith.constant 0 : index
    %c0_2 = arith.constant 0 : index
    %1 = vector.load %arg1[%c0_1, %c0_2] : memref<640x128xbf16, #tpu.memory_space<vmem>>, vector<64x48xbf16>
    %2 = arith.truncf %0 : vector<8x64xf32> to vector<8x64xbf16>
    %cst = arith.constant dense<0.000000e+00> : vector<8x48xf32>
    %3 = tpu.matmul %2, %1, %cst {dimension_numbers = #tpu.dot_dimension_numbers<[1], [0], [0], [1], [0, 0, 1, 1], [], []>} : vector<8x64xbf16>, vector<64x48xbf16>, vector<8x48xf32> -> vector<8x48xf32>
    %c0_3 = arith.constant 0 : index
    %c0_4 = arith.constant 0 : index
    %4 = vector.load %arg2[%c0_3, %c0_4] : memref<24x128xf32, #tpu.memory_space<vmem>>, vector<1x48xf32>
    %5 = vector.broadcast %4 : vector<1x48xf32> to vector<8x48xf32>
    %6 = arith.addf %3, %5 : vector<8x48xf32>
    %cst_5 = arith.constant 0.000000e+00 : f32
    %7 = vector.broadcast %cst_5 : f32 to vector<8x48xf32>
    %8 = arith.maximumf %6, %7 : vector<8x48xf32>
    %c64 = arith.constant 64 : index
    %c0_6 = arith.constant 0 : index
    %9 = vector.load %arg1[%c64, %c0_6] : memref<640x128xbf16, #tpu.memory_space<vmem>>, vector<48x32xbf16>
    %10 = arith.truncf %8 : vector<8x48xf32> to vector<8x48xbf16>
    %cst_7 = arith.constant dense<0.000000e+00> : vector<8x32xf32>
    %11 = tpu.matmul %10, %9, %cst_7 {dimension_numbers = #tpu.dot_dimension_numbers<[1], [0], [0], [1], [0, 0, 1, 1], [], []>} : vector<8x48xbf16>, vector<48x32xbf16>, vector<8x32xf32> -> vector<8x32xf32>
    %c1 = arith.constant 1 : index
    %c0_8 = arith.constant 0 : index
    %12 = vector.load %arg2[%c1, %c0_8] : memref<24x128xf32, #tpu.memory_space<vmem>>, vector<1x32xf32>
    %13 = vector.broadcast %12 : vector<1x32xf32> to vector<8x32xf32>
    %14 = arith.addf %11, %13 : vector<8x32xf32>
    %cst_9 = arith.constant dense<0xFF800000> : vector<8xf32>
    %15 = vector.multi_reduction <maximumf>, %14, %cst_9 [1] : vector<8x32xf32> to vector<8xf32>
    %16 = vector.shape_cast %15 : vector<8xf32> to vector<8x1xf32>
    %17 = vector.broadcast %16 : vector<8x1xf32> to vector<8x32xf32>
    %18 = arith.subf %14, %17 : vector<8x32xf32>
    %19 = math.exp %18 : vector<8x32xf32>
    %cst_10 = arith.constant dense<0.000000e+00> : vector<8xf32>
    %20 = vector.multi_reduction <add>, %19, %cst_10 [1] : vector<8x32xf32> to vector<8xf32>
    %21 = vector.shape_cast %20 : vector<8xf32> to vector<8x1xf32>
    %22 = vector.broadcast %21 : vector<8x1xf32> to vector<8x32xf32>
    %23 = arith.divf %19, %22 : vector<8x32xf32>
    %c192 = arith.constant 192 : index
    %c0_11 = arith.constant 0 : index
    %24 = vector.load %arg1[%c192, %c0_11] : memref<640x128xbf16, #tpu.memory_space<vmem>>, vector<32x96xbf16>
    %25 = arith.truncf %23 : vector<8x32xf32> to vector<8x32xbf16>
    %cst_12 = arith.constant dense<0.000000e+00> : vector<8x96xf32>
    %26 = tpu.matmul %25, %24, %cst_12 {dimension_numbers = #tpu.dot_dimension_numbers<[1], [0], [0], [1], [0, 0, 1, 1], [], []>} : vector<8x32xbf16>, vector<32x96xbf16>, vector<8x96xf32> -> vector<8x96xf32>
    %c4 = arith.constant 4 : index
    %c0_13 = arith.constant 0 : index
    %27 = vector.load %arg2[%c4, %c0_13] : memref<24x128xf32, #tpu.memory_space<vmem>>, vector<1x96xf32>
    %28 = vector.broadcast %27 : vector<1x96xf32> to vector<8x96xf32>
    %29 = arith.addf %26, %28 : vector<8x96xf32>
    %30 = vector.extract_strided_slice %29 {offsets = [0, 0], sizes = [8, 32], strides = [1, 1]} : vector<8x96xf32> to vector<8x32xf32>
    %31 = vector.extract_strided_slice %29 {offsets = [0, 32], sizes = [8, 32], strides = [1, 1]} : vector<8x96xf32> to vector<8x32xf32>
    %32 = vector.extract_strided_slice %29 {offsets = [0, 64], sizes = [8, 32], strides = [1, 1]} : vector<8x96xf32> to vector<8x32xf32>
    %33 = tpu.transpose %31, [1, 0] : vector<8x32xf32> -> vector<32x8xf32>
    %34 = vector.extract_strided_slice %30 {offsets = [0, 0], sizes = [8, 16], strides = [1, 1]} : vector<8x32xf32> to vector<8x16xf32>
    %35 = vector.extract_strided_slice %33 {offsets = [0, 0], sizes = [16, 8], strides = [1, 1]} : vector<32x8xf32> to vector<16x8xf32>
    %36 = arith.truncf %34 : vector<8x16xf32> to vector<8x16xbf16>
    %37 = arith.truncf %35 : vector<16x8xf32> to vector<16x8xbf16>
    %cst_14 = arith.constant dense<0.000000e+00> : vector<8x8xf32>
    %38 = tpu.matmul %36, %37, %cst_14 {dimension_numbers = #tpu.dot_dimension_numbers<[1], [0], [0], [1], [0, 0, 1, 1], [], []>} : vector<8x16xbf16>, vector<16x8xbf16>, vector<8x8xf32> -> vector<8x8xf32>
    %cst_15 = arith.constant dense<0xFF800000> : vector<8xf32>
    %39 = vector.multi_reduction <maximumf>, %38, %cst_15 [1] : vector<8x8xf32> to vector<8xf32>
    %40 = vector.shape_cast %39 : vector<8xf32> to vector<8x1xf32>
    %41 = vector.broadcast %40 : vector<8x1xf32> to vector<8x8xf32>
    %42 = arith.subf %38, %41 : vector<8x8xf32>
    %43 = math.exp %42 : vector<8x8xf32>
    %cst_16 = arith.constant dense<0.000000e+00> : vector<8xf32>
    %44 = vector.multi_reduction <add>, %43, %cst_16 [1] : vector<8x8xf32> to vector<8xf32>
    %45 = vector.shape_cast %44 : vector<8xf32> to vector<8x1xf32>
    %46 = tpu.reciprocal %45 {approx = true} : vector<8x1xf32> -> vector<8x1xf32>
    %47 = vector.broadcast %46 : vector<8x1xf32> to vector<8x8xf32>
    %48 = arith.mulf %43, %47 : vector<8x8xf32>
    %49 = vector.extract_strided_slice %32 {offsets = [0, 0], sizes = [8, 16], strides = [1, 1]} : vector<8x32xf32> to vector<8x16xf32>
    %50 = arith.truncf %48 : vector<8x8xf32> to vector<8x8xbf16>
    %51 = arith.truncf %49 : vector<8x16xf32> to vector<8x16xbf16>
    %cst_17 = arith.constant dense<0.000000e+00> : vector<8x16xf32>
    %52 = tpu.matmul %50, %51, %cst_17 {dimension_numbers = #tpu.dot_dimension_numbers<[1], [0], [0], [1], [0, 0, 1, 1], [], []>} : vector<8x8xbf16>, vector<8x16xbf16>, vector<8x16xf32> -> vector<8x16xf32>
    %53 = vector.extract_strided_slice %30 {offsets = [0, 16], sizes = [8, 16], strides = [1, 1]} : vector<8x32xf32> to vector<8x16xf32>
    %54 = vector.extract_strided_slice %33 {offsets = [16, 0], sizes = [16, 8], strides = [1, 1]} : vector<32x8xf32> to vector<16x8xf32>
    %55 = arith.truncf %53 : vector<8x16xf32> to vector<8x16xbf16>
    %56 = arith.truncf %54 : vector<16x8xf32> to vector<16x8xbf16>
    %cst_18 = arith.constant dense<0.000000e+00> : vector<8x8xf32>
    %57 = tpu.matmul %55, %56, %cst_18 {dimension_numbers = #tpu.dot_dimension_numbers<[1], [0], [0], [1], [0, 0, 1, 1], [], []>} : vector<8x16xbf16>, vector<16x8xbf16>, vector<8x8xf32> -> vector<8x8xf32>
    %cst_19 = arith.constant dense<0xFF800000> : vector<8xf32>
    %58 = vector.multi_reduction <maximumf>, %57, %cst_19 [1] : vector<8x8xf32> to vector<8xf32>
    %59 = vector.shape_cast %58 : vector<8xf32> to vector<8x1xf32>
    %60 = vector.broadcast %59 : vector<8x1xf32> to vector<8x8xf32>
    %61 = arith.subf %57, %60 : vector<8x8xf32>
    %62 = math.exp %61 : vector<8x8xf32>
    %cst_20 = arith.constant dense<0.000000e+00> : vector<8xf32>
    %63 = vector.multi_reduction <add>, %62, %cst_20 [1] : vector<8x8xf32> to vector<8xf32>
    %64 = vector.shape_cast %63 : vector<8xf32> to vector<8x1xf32>
    %65 = tpu.reciprocal %64 {approx = true} : vector<8x1xf32> -> vector<8x1xf32>
    %66 = vector.broadcast %65 : vector<8x1xf32> to vector<8x8xf32>
    %67 = arith.mulf %62, %66 : vector<8x8xf32>
    %68 = vector.extract_strided_slice %32 {offsets = [0, 16], sizes = [8, 16], strides = [1, 1]} : vector<8x32xf32> to vector<8x16xf32>
    %69 = arith.truncf %67 : vector<8x8xf32> to vector<8x8xbf16>
    %70 = arith.truncf %68 : vector<8x16xf32> to vector<8x16xbf16>
    %cst_21 = arith.constant dense<0.000000e+00> : vector<8x16xf32>
    %71 = tpu.matmul %69, %70, %cst_21 {dimension_numbers = #tpu.dot_dimension_numbers<[1], [0], [0], [1], [0, 0, 1, 1], [], []>} : vector<8x8xbf16>, vector<8x16xbf16>, vector<8x16xf32> -> vector<8x16xf32>
    %72 = tpu.concatenate %52, %71 in 1 : vector<8x16xf32>, vector<8x16xf32> -> vector<8x32xf32>
    %c224 = arith.constant 224 : index
    %c0_22 = arith.constant 0 : index
    %73 = vector.load %arg1[%c224, %c0_22] : memref<640x128xbf16, #tpu.memory_space<vmem>>, vector<32x32xbf16>
    %74 = arith.truncf %72 : vector<8x32xf32> to vector<8x32xbf16>
    %cst_23 = arith.constant dense<0.000000e+00> : vector<8x32xf32>
    %75 = tpu.matmul %74, %73, %cst_23 {dimension_numbers = #tpu.dot_dimension_numbers<[1], [0], [0], [1], [0, 0, 1, 1], [], []>} : vector<8x32xbf16>, vector<32x32xbf16>, vector<8x32xf32> -> vector<8x32xf32>
    %c5 = arith.constant 5 : index
    %c0_24 = arith.constant 0 : index
    %76 = vector.load %arg2[%c5, %c0_24] : memref<24x128xf32, #tpu.memory_space<vmem>>, vector<1x32xf32>
    %77 = vector.broadcast %76 : vector<1x32xf32> to vector<8x32xf32>
    %78 = arith.addf %75, %77 : vector<8x32xf32>
    %79 = arith.addf %23, %78 : vector<8x32xf32>
    %c6 = arith.constant 6 : index
    %c0_25 = arith.constant 0 : index
    %80 = vector.load %arg2[%c6, %c0_25] : memref<24x128xf32, #tpu.memory_space<vmem>>, vector<1x32xf32>
    %c7 = arith.constant 7 : index
    %c0_26 = arith.constant 0 : index
    %81 = vector.load %arg2[%c7, %c0_26] : memref<24x128xf32, #tpu.memory_space<vmem>>, vector<1x32xf32>
    %cst_27 = arith.constant dense<0.000000e+00> : vector<8xf32>
    %82 = vector.multi_reduction <add>, %79, %cst_27 [1] : vector<8x32xf32> to vector<8xf32>
    %83 = vector.shape_cast %82 : vector<8xf32> to vector<8x1xf32>
    %cst_28 = arith.constant 3.200000e+01 : f32
    %84 = vector.broadcast %cst_28 : f32 to vector<8x1xf32>
    %85 = arith.divf %83, %84 : vector<8x1xf32>
    %86 = arith.mulf %79, %79 : vector<8x32xf32>
    %cst_29 = arith.constant dense<0.000000e+00> : vector<8xf32>
    %87 = vector.multi_reduction <add>, %86, %cst_29 [1] : vector<8x32xf32> to vector<8xf32>
    %88 = vector.shape_cast %87 : vector<8xf32> to vector<8x1xf32>
    %cst_30 = arith.constant 3.200000e+01 : f32
    %89 = vector.broadcast %cst_30 : f32 to vector<8x1xf32>
    %90 = arith.divf %88, %89 : vector<8x1xf32>
    %91 = arith.mulf %85, %85 : vector<8x1xf32>
    %92 = arith.subf %90, %91 : vector<8x1xf32>
    %93 = vector.broadcast %85 : vector<8x1xf32> to vector<8x32xf32>
    %94 = arith.subf %79, %93 : vector<8x32xf32>
    %cst_31 = arith.constant 9.99999974E-6 : f32
    %95 = vector.broadcast %cst_31 : f32 to vector<8x1xf32>
    %96 = arith.addf %92, %95 : vector<8x1xf32>
    %97 = math.rsqrt %96 : vector<8x1xf32>
    %98 = vector.broadcast %97 : vector<8x1xf32> to vector<8x32xf32>
    %99 = arith.mulf %94, %98 : vector<8x32xf32>
    %100 = vector.broadcast %80 : vector<1x32xf32> to vector<8x32xf32>
    %101 = arith.mulf %99, %100 : vector<8x32xf32>
    %102 = vector.broadcast %81 : vector<1x32xf32> to vector<8x32xf32>
    %103 = arith.addf %101, %102 : vector<8x32xf32>
    %c256 = arith.constant 256 : index
    %c0_32 = arith.constant 0 : index
    %104 = vector.load %arg1[%c256, %c0_32] : memref<640x128xbf16, #tpu.memory_space<vmem>>, vector<32x128xbf16>
    %105 = arith.truncf %103 : vector<8x32xf32> to vector<8x32xbf16>
    %cst_33 = arith.constant dense<0.000000e+00> : vector<8x128xf32>
    %106 = tpu.matmul %105, %104, %cst_33 {dimension_numbers = #tpu.dot_dimension_numbers<[1], [0], [0], [1], [0, 0, 1, 1], [], []>} : vector<8x32xbf16>, vector<32x128xbf16>, vector<8x128xf32> -> vector<8x128xf32>
    %c8 = arith.constant 8 : index
    %c0_34 = arith.constant 0 : index
    %107 = vector.load %arg2[%c8, %c0_34] : memref<24x128xf32, #tpu.memory_space<vmem>>, vector<1x128xf32>
    %108 = vector.broadcast %107 : vector<1x128xf32> to vector<8x128xf32>
    %109 = arith.addf %106, %108 : vector<8x128xf32>
    %cst_35 = arith.constant 0.000000e+00 : f32
    %110 = vector.broadcast %cst_35 : f32 to vector<8x128xf32>
    %111 = arith.maximumf %109, %110 : vector<8x128xf32>
    %c288 = arith.constant 288 : index
    %c0_36 = arith.constant 0 : index
    %112 = vector.load %arg1[%c288, %c0_36] : memref<640x128xbf16, #tpu.memory_space<vmem>>, vector<128x32xbf16>
    %113 = arith.truncf %111 : vector<8x128xf32> to vector<8x128xbf16>
    %cst_37 = arith.constant dense<0.000000e+00> : vector<8x32xf32>
    %114 = tpu.matmul %113, %112, %cst_37 {dimension_numbers = #tpu.dot_dimension_numbers<[1], [0], [0], [1], [0, 0, 1, 1], [], []>} : vector<8x128xbf16>, vector<128x32xbf16>, vector<8x32xf32> -> vector<8x32xf32>
    %c9 = arith.constant 9 : index
    %c0_38 = arith.constant 0 : index
    %115 = vector.load %arg2[%c9, %c0_38] : memref<24x128xf32, #tpu.memory_space<vmem>>, vector<1x32xf32>
    %116 = vector.broadcast %115 : vector<1x32xf32> to vector<8x32xf32>
    %117 = arith.addf %114, %116 : vector<8x32xf32>
    %118 = arith.addf %103, %117 : vector<8x32xf32>
    %c10 = arith.constant 10 : index
    %c0_39 = arith.constant 0 : index
    %119 = vector.load %arg2[%c10, %c0_39] : memref<24x128xf32, #tpu.memory_space<vmem>>, vector<1x32xf32>
    %c11 = arith.constant 11 : index
    %c0_40 = arith.constant 0 : index
    %120 = vector.load %arg2[%c11, %c0_40] : memref<24x128xf32, #tpu.memory_space<vmem>>, vector<1x32xf32>
    %cst_41 = arith.constant dense<0.000000e+00> : vector<8xf32>
    %121 = vector.multi_reduction <add>, %118, %cst_41 [1] : vector<8x32xf32> to vector<8xf32>
    %122 = vector.shape_cast %121 : vector<8xf32> to vector<8x1xf32>
    %cst_42 = arith.constant 3.200000e+01 : f32
    %123 = vector.broadcast %cst_42 : f32 to vector<8x1xf32>
    %124 = arith.divf %122, %123 : vector<8x1xf32>
    %125 = arith.mulf %118, %118 : vector<8x32xf32>
    %cst_43 = arith.constant dense<0.000000e+00> : vector<8xf32>
    %126 = vector.multi_reduction <add>, %125, %cst_43 [1] : vector<8x32xf32> to vector<8xf32>
    %127 = vector.shape_cast %126 : vector<8xf32> to vector<8x1xf32>
    %cst_44 = arith.constant 3.200000e+01 : f32
    %128 = vector.broadcast %cst_44 : f32 to vector<8x1xf32>
    %129 = arith.divf %127, %128 : vector<8x1xf32>
    %130 = arith.mulf %124, %124 : vector<8x1xf32>
    %131 = arith.subf %129, %130 : vector<8x1xf32>
    %132 = vector.broadcast %124 : vector<8x1xf32> to vector<8x32xf32>
    %133 = arith.subf %118, %132 : vector<8x32xf32>
    %cst_45 = arith.constant 9.99999974E-6 : f32
    %134 = vector.broadcast %cst_45 : f32 to vector<8x1xf32>
    %135 = arith.addf %131, %134 : vector<8x1xf32>
    %136 = math.rsqrt %135 : vector<8x1xf32>
    %137 = vector.broadcast %136 : vector<8x1xf32> to vector<8x32xf32>
    %138 = arith.mulf %133, %137 : vector<8x32xf32>
    %139 = vector.broadcast %119 : vector<1x32xf32> to vector<8x32xf32>
    %140 = arith.mulf %138, %139 : vector<8x32xf32>
    %141 = vector.broadcast %120 : vector<1x32xf32> to vector<8x32xf32>
    %142 = arith.addf %140, %141 : vector<8x32xf32>
    %c416 = arith.constant 416 : index
    %c0_46 = arith.constant 0 : index
    %143 = vector.load %arg1[%c416, %c0_46] : memref<640x128xbf16, #tpu.memory_space<vmem>>, vector<32x96xbf16>
    %144 = arith.truncf %142 : vector<8x32xf32> to vector<8x32xbf16>
    %cst_47 = arith.constant dense<0.000000e+00> : vector<8x96xf32>
    %145 = tpu.matmul %144, %143, %cst_47 {dimension_numbers = #tpu.dot_dimension_numbers<[1], [0], [0], [1], [0, 0, 1, 1], [], []>} : vector<8x32xbf16>, vector<32x96xbf16>, vector<8x96xf32> -> vector<8x96xf32>
    %c12 = arith.constant 12 : index
    %c0_48 = arith.constant 0 : index
    %146 = vector.load %arg2[%c12, %c0_48] : memref<24x128xf32, #tpu.memory_space<vmem>>, vector<1x96xf32>
    %147 = vector.broadcast %146 : vector<1x96xf32> to vector<8x96xf32>
    %148 = arith.addf %145, %147 : vector<8x96xf32>
    %149 = vector.extract_strided_slice %148 {offsets = [0, 0], sizes = [8, 32], strides = [1, 1]} : vector<8x96xf32> to vector<8x32xf32>
    %150 = vector.extract_strided_slice %148 {offsets = [0, 32], sizes = [8, 32], strides = [1, 1]} : vector<8x96xf32> to vector<8x32xf32>
    %151 = vector.extract_strided_slice %148 {offsets = [0, 64], sizes = [8, 32], strides = [1, 1]} : vector<8x96xf32> to vector<8x32xf32>
    %152 = tpu.transpose %150, [1, 0] : vector<8x32xf32> -> vector<32x8xf32>
    %153 = vector.extract_strided_slice %149 {offsets = [0, 0], sizes = [8, 16], strides = [1, 1]} : vector<8x32xf32> to vector<8x16xf32>
    %154 = vector.extract_strided_slice %152 {offsets = [0, 0], sizes = [16, 8], strides = [1, 1]} : vector<32x8xf32> to vector<16x8xf32>
    %155 = arith.truncf %153 : vector<8x16xf32> to vector<8x16xbf16>
    %156 = arith.truncf %154 : vector<16x8xf32> to vector<16x8xbf16>
    %cst_49 = arith.constant dense<0.000000e+00> : vector<8x8xf32>
    %157 = tpu.matmul %155, %156, %cst_49 {dimension_numbers = #tpu.dot_dimension_numbers<[1], [0], [0], [1], [0, 0, 1, 1], [], []>} : vector<8x16xbf16>, vector<16x8xbf16>, vector<8x8xf32> -> vector<8x8xf32>
    %cst_50 = arith.constant dense<0xFF800000> : vector<8xf32>
    %158 = vector.multi_reduction <maximumf>, %157, %cst_50 [1] : vector<8x8xf32> to vector<8xf32>
    %159 = vector.shape_cast %158 : vector<8xf32> to vector<8x1xf32>
    %160 = vector.broadcast %159 : vector<8x1xf32> to vector<8x8xf32>
    %161 = arith.subf %157, %160 : vector<8x8xf32>
    %162 = math.exp %161 : vector<8x8xf32>
    %cst_51 = arith.constant dense<0.000000e+00> : vector<8xf32>
    %163 = vector.multi_reduction <add>, %162, %cst_51 [1] : vector<8x8xf32> to vector<8xf32>
    %164 = vector.shape_cast %163 : vector<8xf32> to vector<8x1xf32>
    %165 = tpu.reciprocal %164 {approx = true} : vector<8x1xf32> -> vector<8x1xf32>
    %166 = vector.broadcast %165 : vector<8x1xf32> to vector<8x8xf32>
    %167 = arith.mulf %162, %166 : vector<8x8xf32>
    %168 = vector.extract_strided_slice %151 {offsets = [0, 0], sizes = [8, 16], strides = [1, 1]} : vector<8x32xf32> to vector<8x16xf32>
    %169 = arith.truncf %167 : vector<8x8xf32> to vector<8x8xbf16>
    %170 = arith.truncf %168 : vector<8x16xf32> to vector<8x16xbf16>
    %cst_52 = arith.constant dense<0.000000e+00> : vector<8x16xf32>
    %171 = tpu.matmul %169, %170, %cst_52 {dimension_numbers = #tpu.dot_dimension_numbers<[1], [0], [0], [1], [0, 0, 1, 1], [], []>} : vector<8x8xbf16>, vector<8x16xbf16>, vector<8x16xf32> -> vector<8x16xf32>
    %172 = vector.extract_strided_slice %149 {offsets = [0, 16], sizes = [8, 16], strides = [1, 1]} : vector<8x32xf32> to vector<8x16xf32>
    %173 = vector.extract_strided_slice %152 {offsets = [16, 0], sizes = [16, 8], strides = [1, 1]} : vector<32x8xf32> to vector<16x8xf32>
    %174 = arith.truncf %172 : vector<8x16xf32> to vector<8x16xbf16>
    %175 = arith.truncf %173 : vector<16x8xf32> to vector<16x8xbf16>
    %cst_53 = arith.constant dense<0.000000e+00> : vector<8x8xf32>
    %176 = tpu.matmul %174, %175, %cst_53 {dimension_numbers = #tpu.dot_dimension_numbers<[1], [0], [0], [1], [0, 0, 1, 1], [], []>} : vector<8x16xbf16>, vector<16x8xbf16>, vector<8x8xf32> -> vector<8x8xf32>
    %cst_54 = arith.constant dense<0xFF800000> : vector<8xf32>
    %177 = vector.multi_reduction <maximumf>, %176, %cst_54 [1] : vector<8x8xf32> to vector<8xf32>
    %178 = vector.shape_cast %177 : vector<8xf32> to vector<8x1xf32>
    %179 = vector.broadcast %178 : vector<8x1xf32> to vector<8x8xf32>
    %180 = arith.subf %176, %179 : vector<8x8xf32>
    %181 = math.exp %180 : vector<8x8xf32>
    %cst_55 = arith.constant dense<0.000000e+00> : vector<8xf32>
    %182 = vector.multi_reduction <add>, %181, %cst_55 [1] : vector<8x8xf32> to vector<8xf32>
    %183 = vector.shape_cast %182 : vector<8xf32> to vector<8x1xf32>
    %184 = tpu.reciprocal %183 {approx = true} : vector<8x1xf32> -> vector<8x1xf32>
    %185 = vector.broadcast %184 : vector<8x1xf32> to vector<8x8xf32>
    %186 = arith.mulf %181, %185 : vector<8x8xf32>
    %187 = vector.extract_strided_slice %151 {offsets = [0, 16], sizes = [8, 16], strides = [1, 1]} : vector<8x32xf32> to vector<8x16xf32>
    %188 = arith.truncf %186 : vector<8x8xf32> to vector<8x8xbf16>
    %189 = arith.truncf %187 : vector<8x16xf32> to vector<8x16xbf16>
    %cst_56 = arith.constant dense<0.000000e+00> : vector<8x16xf32>
    %190 = tpu.matmul %188, %189, %cst_56 {dimension_numbers = #tpu.dot_dimension_numbers<[1], [0], [0], [1], [0, 0, 1, 1], [], []>} : vector<8x8xbf16>, vector<8x16xbf16>, vector<8x16xf32> -> vector<8x16xf32>
    %191 = tpu.concatenate %171, %190 in 1 : vector<8x16xf32>, vector<8x16xf32> -> vector<8x32xf32>
    %c448 = arith.constant 448 : index
    %c0_57 = arith.constant 0 : index
    %192 = vector.load %arg1[%c448, %c0_57] : memref<640x128xbf16, #tpu.memory_space<vmem>>, vector<32x32xbf16>
    %193 = arith.truncf %191 : vector<8x32xf32> to vector<8x32xbf16>
    %cst_58 = arith.constant dense<0.000000e+00> : vector<8x32xf32>
    %194 = tpu.matmul %193, %192, %cst_58 {dimension_numbers = #tpu.dot_dimension_numbers<[1], [0], [0], [1], [0, 0, 1, 1], [], []>} : vector<8x32xbf16>, vector<32x32xbf16>, vector<8x32xf32> -> vector<8x32xf32>
    %c13 = arith.constant 13 : index
    %c0_59 = arith.constant 0 : index
    %195 = vector.load %arg2[%c13, %c0_59] : memref<24x128xf32, #tpu.memory_space<vmem>>, vector<1x32xf32>
    %196 = vector.broadcast %195 : vector<1x32xf32> to vector<8x32xf32>
    %197 = arith.addf %194, %196 : vector<8x32xf32>
    %198 = arith.addf %142, %197 : vector<8x32xf32>
    %c14 = arith.constant 14 : index
    %c0_60 = arith.constant 0 : index
    %199 = vector.load %arg2[%c14, %c0_60] : memref<24x128xf32, #tpu.memory_space<vmem>>, vector<1x32xf32>
    %c15 = arith.constant 15 : index
    %c0_61 = arith.constant 0 : index
    %200 = vector.load %arg2[%c15, %c0_61] : memref<24x128xf32, #tpu.memory_space<vmem>>, vector<1x32xf32>
    %cst_62 = arith.constant dense<0.000000e+00> : vector<8xf32>
    %201 = vector.multi_reduction <add>, %198, %cst_62 [1] : vector<8x32xf32> to vector<8xf32>
    %202 = vector.shape_cast %201 : vector<8xf32> to vector<8x1xf32>
    %cst_63 = arith.constant 3.200000e+01 : f32
    %203 = vector.broadcast %cst_63 : f32 to vector<8x1xf32>
    %204 = arith.divf %202, %203 : vector<8x1xf32>
    %205 = arith.mulf %198, %198 : vector<8x32xf32>
    %cst_64 = arith.constant dense<0.000000e+00> : vector<8xf32>
    %206 = vector.multi_reduction <add>, %205, %cst_64 [1] : vector<8x32xf32> to vector<8xf32>
    %207 = vector.shape_cast %206 : vector<8xf32> to vector<8x1xf32>
    %cst_65 = arith.constant 3.200000e+01 : f32
    %208 = vector.broadcast %cst_65 : f32 to vector<8x1xf32>
    %209 = arith.divf %207, %208 : vector<8x1xf32>
    %210 = arith.mulf %204, %204 : vector<8x1xf32>
    %211 = arith.subf %209, %210 : vector<8x1xf32>
    %212 = vector.broadcast %204 : vector<8x1xf32> to vector<8x32xf32>
    %213 = arith.subf %198, %212 : vector<8x32xf32>
    %cst_66 = arith.constant 9.99999974E-6 : f32
    %214 = vector.broadcast %cst_66 : f32 to vector<8x1xf32>
    %215 = arith.addf %211, %214 : vector<8x1xf32>
    %216 = math.rsqrt %215 : vector<8x1xf32>
    %217 = vector.broadcast %216 : vector<8x1xf32> to vector<8x32xf32>
    %218 = arith.mulf %213, %217 : vector<8x32xf32>
    %219 = vector.broadcast %199 : vector<1x32xf32> to vector<8x32xf32>
    %220 = arith.mulf %218, %219 : vector<8x32xf32>
    %221 = vector.broadcast %200 : vector<1x32xf32> to vector<8x32xf32>
    %222 = arith.addf %220, %221 : vector<8x32xf32>
    %c480 = arith.constant 480 : index
    %c0_67 = arith.constant 0 : index
    %223 = vector.load %arg1[%c480, %c0_67] : memref<640x128xbf16, #tpu.memory_space<vmem>>, vector<32x128xbf16>
    %224 = arith.truncf %222 : vector<8x32xf32> to vector<8x32xbf16>
    %cst_68 = arith.constant dense<0.000000e+00> : vector<8x128xf32>
    %225 = tpu.matmul %224, %223, %cst_68 {dimension_numbers = #tpu.dot_dimension_numbers<[1], [0], [0], [1], [0, 0, 1, 1], [], []>} : vector<8x32xbf16>, vector<32x128xbf16>, vector<8x128xf32> -> vector<8x128xf32>
    %c16 = arith.constant 16 : index
    %c0_69 = arith.constant 0 : index
    %226 = vector.load %arg2[%c16, %c0_69] : memref<24x128xf32, #tpu.memory_space<vmem>>, vector<1x128xf32>
    %227 = vector.broadcast %226 : vector<1x128xf32> to vector<8x128xf32>
    %228 = arith.addf %225, %227 : vector<8x128xf32>
    %cst_70 = arith.constant 0.000000e+00 : f32
    %229 = vector.broadcast %cst_70 : f32 to vector<8x128xf32>
    %230 = arith.maximumf %228, %229 : vector<8x128xf32>
    %c512 = arith.constant 512 : index
    %c0_71 = arith.constant 0 : index
    %231 = vector.load %arg1[%c512, %c0_71] : memref<640x128xbf16, #tpu.memory_space<vmem>>, vector<128x32xbf16>
    %232 = arith.truncf %230 : vector<8x128xf32> to vector<8x128xbf16>
    %cst_72 = arith.constant dense<0.000000e+00> : vector<8x32xf32>
    %233 = tpu.matmul %232, %231, %cst_72 {dimension_numbers = #tpu.dot_dimension_numbers<[1], [0], [0], [1], [0, 0, 1, 1], [], []>} : vector<8x128xbf16>, vector<128x32xbf16>, vector<8x32xf32> -> vector<8x32xf32>
    %c17 = arith.constant 17 : index
    %c0_73 = arith.constant 0 : index
    %234 = vector.load %arg2[%c17, %c0_73] : memref<24x128xf32, #tpu.memory_space<vmem>>, vector<1x32xf32>
    %235 = vector.broadcast %234 : vector<1x32xf32> to vector<8x32xf32>
    %236 = arith.addf %233, %235 : vector<8x32xf32>
    %237 = arith.addf %222, %236 : vector<8x32xf32>
    %c18 = arith.constant 18 : index
    %c0_74 = arith.constant 0 : index
    %238 = vector.load %arg2[%c18, %c0_74] : memref<24x128xf32, #tpu.memory_space<vmem>>, vector<1x32xf32>
    %c19 = arith.constant 19 : index
    %c0_75 = arith.constant 0 : index
    %239 = vector.load %arg2[%c19, %c0_75] : memref<24x128xf32, #tpu.memory_space<vmem>>, vector<1x32xf32>
    %cst_76 = arith.constant dense<0.000000e+00> : vector<8xf32>
    %240 = vector.multi_reduction <add>, %237, %cst_76 [1] : vector<8x32xf32> to vector<8xf32>
    %241 = vector.shape_cast %240 : vector<8xf32> to vector<8x1xf32>
    %cst_77 = arith.constant 3.200000e+01 : f32
    %242 = vector.broadcast %cst_77 : f32 to vector<8x1xf32>
    %243 = arith.divf %241, %242 : vector<8x1xf32>
    %244 = arith.mulf %237, %237 : vector<8x32xf32>
    %cst_78 = arith.constant dense<0.000000e+00> : vector<8xf32>
    %245 = vector.multi_reduction <add>, %244, %cst_78 [1] : vector<8x32xf32> to vector<8xf32>
    %246 = vector.shape_cast %245 : vector<8xf32> to vector<8x1xf32>
    %cst_79 = arith.constant 3.200000e+01 : f32
    %247 = vector.broadcast %cst_79 : f32 to vector<8x1xf32>
    %248 = arith.divf %246, %247 : vector<8x1xf32>
    %249 = arith.mulf %243, %243 : vector<8x1xf32>
    %250 = arith.subf %248, %249 : vector<8x1xf32>
    %251 = vector.broadcast %243 : vector<8x1xf32> to vector<8x32xf32>
    %252 = arith.subf %237, %251 : vector<8x32xf32>
    %cst_80 = arith.constant 9.99999974E-6 : f32
    %253 = vector.broadcast %cst_80 : f32 to vector<8x1xf32>
    %254 = arith.addf %250, %253 : vector<8x1xf32>
    %255 = math.rsqrt %254 : vector<8x1xf32>
    %256 = vector.broadcast %255 : vector<8x1xf32> to vector<8x32xf32>
    %257 = arith.mulf %252, %256 : vector<8x32xf32>
    %258 = vector.broadcast %238 : vector<1x32xf32> to vector<8x32xf32>
    %259 = arith.mulf %257, %258 : vector<8x32xf32>
    %260 = vector.broadcast %239 : vector<1x32xf32> to vector<8x32xf32>
    %261 = arith.addf %259, %260 : vector<8x32xf32>
    %c112 = arith.constant 112 : index
    %c0_81 = arith.constant 0 : index
    %262 = vector.load %arg1[%c112, %c0_81] : memref<640x128xbf16, #tpu.memory_space<vmem>>, vector<32x48xbf16>
    %263 = arith.truncf %261 : vector<8x32xf32> to vector<8x32xbf16>
    %cst_82 = arith.constant dense<0.000000e+00> : vector<8x48xf32>
    %264 = tpu.matmul %263, %262, %cst_82 {dimension_numbers = #tpu.dot_dimension_numbers<[1], [0], [0], [1], [0, 0, 1, 1], [], []>} : vector<8x32xbf16>, vector<32x48xbf16>, vector<8x48xf32> -> vector<8x48xf32>
    %c2 = arith.constant 2 : index
    %c0_83 = arith.constant 0 : index
    %265 = vector.load %arg2[%c2, %c0_83] : memref<24x128xf32, #tpu.memory_space<vmem>>, vector<1x48xf32>
    %266 = vector.broadcast %265 : vector<1x48xf32> to vector<8x48xf32>
    %267 = arith.addf %264, %266 : vector<8x48xf32>
    %cst_84 = arith.constant 0.000000e+00 : f32
    %268 = vector.broadcast %cst_84 : f32 to vector<8x48xf32>
    %269 = arith.maximumf %267, %268 : vector<8x48xf32>
    %c144 = arith.constant 144 : index
    %c0_85 = arith.constant 0 : index
    %270 = vector.load %arg1[%c144, %c0_85] : memref<640x128xbf16, #tpu.memory_space<vmem>>, vector<48x64xbf16>
    %271 = arith.truncf %269 : vector<8x48xf32> to vector<8x48xbf16>
    %cst_86 = arith.constant dense<0.000000e+00> : vector<8x64xf32>
    %272 = tpu.matmul %271, %270, %cst_86 {dimension_numbers = #tpu.dot_dimension_numbers<[1], [0], [0], [1], [0, 0, 1, 1], [], []>} : vector<8x48xbf16>, vector<48x64xbf16>, vector<8x64xf32> -> vector<8x64xf32>
    %c3 = arith.constant 3 : index
    %c0_87 = arith.constant 0 : index
    %273 = vector.load %arg2[%c3, %c0_87] : memref<24x128xf32, #tpu.memory_space<vmem>>, vector<1x64xf32>
    %274 = vector.broadcast %273 : vector<1x64xf32> to vector<8x64xf32>
    %275 = arith.addf %272, %274 : vector<8x64xf32>
    %cst_88 = arith.constant 0.000000e+00 : f32
    %276 = vector.broadcast %cst_88 : f32 to vector<8x64xf32>
    %277 = arith.maximumf %275, %276 : vector<8x64xf32>
    %cst_89 = arith.constant 0.000000e+00 : f32
    %278 = vector.broadcast %cst_89 : f32 to vector<8x32xf32>
    %279 = tpu.concatenate %23, %277, %278 in 1 : vector<8x32xf32>, vector<8x64xf32>, vector<8x32xf32> -> vector<8x128xf32>
    %c0_90 = arith.constant 0 : index
    %c0_91 = arith.constant 0 : index
    %280 = vector.load %arg3[%c0_90, %c0_91] : memref<8x128xf32, #tpu.memory_space<vmem>>, vector<8x128xf32>
    tpu.vector_store %arg3[%c0_90, %c0_91], %279 {strides = array<i32>} : memref<8x128xf32, #tpu.memory_space<vmem>>, vector<8x128xf32>,
    return
  }
}

</mosaic_0001>

<bundles_post_ra>
// kernel: autoencoder_forward.1
= control target key start
LH: loop header
LB: loop body
LE: loop exit
PB: predicated region body
PF: predicated region fallthrough
CT: control target
= control target key end

     0   :  { %8 = vsyncpa [#allocation3], 0  ;;  %s2312_s0 = inlined_call_operand.hbm [shape: f32[8,64], index: 0, kind: input, shape index: {}]   ;;  %s2313_s1 = inlined_call_operand.hbm [shape: bf16[640,128], index: 1, kind: input, shape index: {}]   ;;  %s2314_s2 = inlined_call_operand.hbm [shape: f32[24,128], index: 2, kind: input, shape index: {}]   ;;  %s2315_s3 = inlined_call_operand.vmem [shape: f32[8,128], index: 3, kind: output, shape index: {}]  }
   0x1   :  { %9 = vsyncpa [#allocation5], 0  ;;  %s2086_s12 = smov [#allocation4]   ;;  %s2016_s16 = scalar_lea.hbm %s2313_s1, 5120 }
   0x2   :  { %s25_s13 = sshll.u32 %s2086_s12, 4  ;;  %p2017_p0 = scmp.ne.s32.totalorder %s2313_s1, %s2016_s16  ;;  %s26_s13 = int_to_ptr.vmem [resolvable:$true] %s25_s13 }
   0x3   :  { %p2020_p1 = scmp.lt.u32.totalorder %s2016_s16, %s2313_s1 }
   0x5   :  { %p2022_p2 = pnand %p2020_p1, %p2017_p0 }
   0x7   :  { %2025 = shalt.err (!%p2022_p2)
}
   0x8   :  { %s2026_s21 = scalar_lea.vmem %s26_s13, 5120  ;;  %p2031_p4 = scmp.lt.s32.totalorder %s26_s13, %s26_s13 }
   0x9   :  { %p2027_p3 = scmp.ne.s32.totalorder %s26_s13, %s2026_s21  ;;  %p2032_p5 = scmp.lt.s32.totalorder %s2026_s21, %s2026_s21 }
   0xb   :  { %p2033_p6 = por %p2032_p5, %p2031_p4 }
   0xd   :  { %p2034_p7 = pnand %p2033_p6, %p2027_p3 }
   0xf   :  { %2037 = shalt.err (!%p2034_p7)
}
  0x10   :  { %s2087_s22 = smov 64   ;;  %s2088_s23 = smov 4  }
  0x11   :  { %31 = dma.hbm_to_vmem [thread:$0]  %s2313_s1, 5120, %s26_s13, [#allocation5], %s2087_s22, %s2087_s22, %s2088_s23  }
  0x12   :  { %s2089_s26 = smov [#allocation2]   ;;  %s2090_s28 = smov [#allocation6]  }
  0x13   :  { %s16_s27 = sshll.u32 %s2089_s26, 4  ;;  %s37_s29 = sshll.u32 %s2090_s28, 4  ;;  %s17_s27 = int_to_ptr.vmem [resolvable:$true] %s16_s27  ;;  %s38_s29 = int_to_ptr.vmem [resolvable:$true] %s37_s29 }
  0x14   :  { %s2038_s5 = scalar_lea.hbm %s2312_s0, 128 }
  0x15   :  { %p2039_p8 = scmp.ne.s32.totalorder %s2312_s0, %s2038_s5  ;;  %p2042_p9 = scmp.lt.u32.totalorder %s2038_s5, %s2312_s0 }
  0x17   :  { %p2044_p10 = pnand %p2042_p9, %p2039_p8 }
  0x19   :  { %2047 = shalt.err (!%p2044_p10)
}
  0x1a   :  { %s2048_s1 = scalar_lea.vmem %s17_s27, 128  ;;  %p2053_p12 = scmp.lt.s32.totalorder %s17_s27, %s17_s27 }
  0x1b   :  { %p2049_p11 = scmp.ne.s32.totalorder %s17_s27, %s2048_s1  ;;  %p2054_p13 = scmp.lt.s32.totalorder %s2048_s1, %s2048_s1 }
  0x1d   :  { %p2055_p0 = por %p2054_p13, %p2053_p12 }
  0x1f   :  { %p2056_p1 = pnand %p2055_p0, %p2049_p11 }
  0x21   :  { %2059 = shalt.err (!%p2056_p1)
}
  0x22   :  { %19 = dma.hbm_to_vmem [thread:$0]  %s2312_s0, 128, %s17_s27, [#allocation3]  }
  0x23   :  { %s2060_s14 = scalar_lea.hbm %s2314_s2, 384 }
  0x24   :  { %p2061_p2 = scmp.ne.s32.totalorder %s2314_s2, %s2060_s14  ;;  %p2064_p3 = scmp.lt.u32.totalorder %s2060_s14, %s2314_s2 }
  0x26   :  { %p2066_p4 = pnand %p2064_p3, %p2061_p2 }
  0x28   :  { %2069 = shalt.err (!%p2066_p4)
}
  0x29   :  { %s2070_s19 = scalar_lea.vmem %s38_s29, 384  ;;  %p2075_p6 = scmp.lt.s32.totalorder %s38_s29, %s38_s29 }
  0x2a   :  { %p2071_p5 = scmp.ne.s32.totalorder %s38_s29, %s2070_s19  ;;  %p2076_p7 = scmp.lt.s32.totalorder %s2070_s19, %s2070_s19 }
  0x2c   :  { %p2077_p8 = por %p2076_p7, %p2075_p6 }
  0x2e   :  { %p2078_p9 = pnand %p2077_p8, %p2071_p5 }
  0x30   :  { %2081 = shalt.err (!%p2078_p9)
}
  0x31   :  { %s2091_s0 = smov 128   ;;  %s2092_s20 = smov 8  }
  0x32   :  { %43 = dma.hbm_to_vmem [thread:$0]  %s2314_s2, 384, %s38_s29, [#allocation5], %s2091_s0, %s2091_s0, %s2092_s20  }
  0x33   :  { %2082 = dma.done.wait [#allocation3], 128  }
  0x34   :  { %2083 = vsyncadd [#allocation3], 4294967168 }
  0x35   :  { %2084 = dma.done.wait [#allocation5], 5504  }
  0x36   :  { %2085 = vsyncadd [#allocation5], 4294961792  ;;  %v2093_v0 = vmov 0.0   ;;  %vm2094_vm0 = vmmov 0   ;;  %v1948_v1 = vld [vmem:[#allocation4] sm:$0xff]   ;;  %v1949_v2 = vld [vmem:[#allocation4 + $0x8] sm:$0xff]  }
  0x37   :  { %1758 = vmatprep.subr.bf16.mxu0 %v2093_v0  ;;  %1766 = vmatprep.mubr.msk.bf16.mxu0 %vm2094_vm0, %v2093_v0  ;;  %v1950_v3 = vld [vmem:[#allocation4 + $0x10] sm:$0xff]   ;;  %v1952_v4 = vld [vmem:[#allocation4 + $0x20] sm:$0xff]   ;;  %vm93_vm1 = vcmask 523264   ;;  %v1951_v5 = vld [vmem:[#allocation4 + $0x18] sm:$0xff]   ;;  %vm168_vm2 = vcmask 392192   ;;  %vm212_vm3 = vcmask 261120  }
  0x38   :  { %1770 = vmatprep.subr.bf16.mxu1 %v2093_v0  ;;  %1776 = vmatprep.mubr.msk.bf16.mxu1 %vm2094_vm0, %v2093_v0  ;;  %v54_v6 = vld [vmem:[#allocation2] sm:$0xff]  ;;  %v1953_v8 = vld [vmem:[#allocation4 + $0x28] sm:$0xff]   ;;  %v1954_v9 = vld [vmem:[#allocation4 + $0x30] sm:$0xff]   ;;  %s2095_s2 = smov 96   ;;  %s2096_s24 = smov 112   ;;  %vm327_vm4 = vcmask 130048  }
  0x39   :  { %1759 = vmatpush3.bf16.msra.mxu0 %v1948_v1  ;;  %1771 = vmatpush3.bf16.msra.mxu1 %v1952_v4  ;;  %v63_v7 = vpack.c.bf16 %v54_v6, %v54_v6  ;;  %v1612_v10 = vld [vmem:[#allocation6] ss:$0 sm:$0xff]  ;;  %v1618_v18 = vld [vmem:[#allocation6 + $0x1] ss:$0 sm:$0xff]  ;;  %v1956_v31 = vld [vmem:[#allocation4 + $0x68] sm:$0xff]   ;;  %vm390_vm5 = vcmask 1043456  }
  0x3a   :  { %1760 = vmatprep.subr.bf16.mxu0 %v2093_v0  ;;  %1772 = vmatprep.subr.bf16.mxu1 %v2093_v0  ;;  %v1955_v30 = vld [vmem:[#allocation4 + $0x60] sm:$0xff]   ;;  %vm371_vm6 = vcmask 64512   ;;  %s2097_s25 = smov 48   ;;  %s2098_s26 = smov 16   ;;  %vm1603_vm7 = vcmask 785408  }
  0x3b   :  { %v1623_v36 = vld [vmem:[#allocation6 + $0x4] ss:$0 sm:$0xff] }
  0x3d   :  { %1761 = vmatpush3.bf16.msra.mxu0 %v1949_v2  ;;  %1773 = vmatpush3.bf16.msra.mxu1 %v1953_v8 }
  0x3e   :  { %1762 = vmatprep.subr.bf16.mxu0 %v2093_v0  ;;  %1774 = vmatprep.subr.bf16.mxu1 %v2093_v0 }
  0x41   :  { %1763 = vmatpush3.bf16.msra.mxu0 %v1950_v3  ;;  %1775 = vmatpush3.bf16.msra.mxu1 %v1954_v9 }
  0x42   :  { %1764 = vmatprep.subr.bf16.mxu0 %v2093_v0  ;;  %1780 = vmatprep.subr.bf16.mxu1 %v2093_v0 }
  0x45   :  { %1765 = vmatpush3.bf16.msra.mxu0 %v1951_v5 }
  0x46   :  { %1788 = vmatprep.subr.bf16.mxu0 %v2093_v0 }
  0x48   :  { %1767 = vmatmul.mubr.msk.bf16.vlgmr.msra.gmra.mrb[0].mxu0 %vm93_vm1, %v63_v7 }
  0x49   :  { %1790 = vmatprep.mubr.msk.bf16.mxu0 %vm2094_vm0, %v2093_v0 }
 0x11b   :  { %v131_v11 = vpop.f32.mrb[0].mxu0 }
 0x11c   :  { %v132_v12 = vadd.f32 %v1612_v10, %v131_v11  ;;  %v1768_v13 = vpop.f32.mrb[1].mxu0 }
 0x11d   :  { %v134_v14 = vpop.f32.mrb[2].mxu0 }
 0x11e   :  { %v137_v15 = vmax.f32 %v132_v12, 0.0  ;;  %v1769_v16 = vpop.f32.mrb[3].mxu0 }
 0x120   :  { %v144_v17 = vpack.c.bf16 %v137_v15, %v137_v15 }
 0x122   :  { %1777 = vmatmul.mubr.msk.bf16.vlgmr.msra.gmra.mrb[0].mxu1 %vm168_vm2, %v144_v17 }
 0x123   :  { %1784 = vmatprep.mubr.msk.bf16.mxu1 %vm2094_vm0, %v2093_v0  ;;  %1781 = vmatpush3.bf16.msra.mxu1 %v1955_v30 }
 0x124   :  { %1782 = vmatprep.subr.bf16.mxu1 %v2093_v0 }
 0x127   :  { %1783 = vmatpush3.bf16.msra.mxu1 %v1956_v31 }
 0x128   :  { %1794 = vmatprep.subr.bf16.mxu1 %v2093_v0 }
 0x1f5   :  { %v206_v19 = vpop.f32.mrb[0].mxu1 }
 0x1f6   :  { %v207_v20 = vadd.f32 %v1618_v18, %v206_v19  ;;  %v1778_v21 = vpop.f32.mrb[1].mxu1 }
 0x1f7   :  { %v209_v22 = vpop.f32.mrb[2].mxu1  ;;  %v1958_v21 = vld [vmem:[#allocation4 + $0x78] sm:$0xff]  }
 0x1f8   :  { %v1779_v23 = vpop.f32.mrb[3].mxu1  ;;  %v213_v24 = vsel %vm212_vm3, %v207_v20, -inf }
 0x1f9   :  { %214 = vmax.xlane.f32.xlu0 %v213_v24 }
 0x286   :  { %v215_v25 = vpop.xlane.xlu0 %214 }
 0x287   :  { %v216_v26 = vsub.f32 %v207_v20, %v215_v25  ;;  %v1957_v20 = vld [vmem:[#allocation4 + $0x70] sm:$0xff]  }
 0x289   :  { %v217_v27 = vmul.f32 1.442695, %v216_v26 }
 0x28b   :  { %1988 = vpow2.f32 %v217_v27 }
 0x295   :  { %v1989_v28 = vpop.eup %1988 }
 0x296   :  { %v219_v29 = vsel %vm212_vm3, %v1989_v28, 0.0 }
 0x297   :  { %220 = vadd.xlane.f32.xlu0 %v219_v29 }
 0x324   :  { %v221_v32 = vpop.xlane.xlu0 %220 }
 0x325   :  { %1990 = vrcp.f32 %v221_v32 }
 0x32f   :  { %v1991_v33 = vpop.eup %1990 }
 0x330   :  { %v2180_v34 = vmul.f32 %v1991_v33, %v1989_v28  ;;  %v1631_v33 = vld [vmem:[#allocation6 + $0x5] ss:$0 sm:$0xff] }
 0x332   :  { %v228_v35 = vpack.c.bf16 %v2180_v34, %v2180_v34 }
 0x334   :  { %1785 = vmatmul.mubr.msk.bf16.vlgmr.msra.gmra.mrb[4].mxu1 %vm212_vm3, %v228_v35 }
 0x335   :  { %1796 = vmatprep.mubr.msk.bf16.mxu1 %vm2094_vm0, %v2093_v0 }
 0x407   :  { %v283_v37 = vpop.f32.mrb[4].mxu1 }
 0x408   :  { %v284_v38 = vadd.f32 %v1623_v36, %v283_v37  ;;  %v1786_v39 = vpop.f32.mrb[5].mxu1 }
 0x409   :  { %v286_v40 = vpop.f32.mrb[6].mxu1 }
 0x40a   :  { %290 = vrot.lane.b32.xlu1 %v284_v38, %s2095_s2  ;;  %v1787_v41 = vpop.f32.mrb[7].mxu1  ;;  %v325_v42 = vpack.c.bf16 %v284_v38, %v284_v38 }
 0x40e   :  { %435 = vrot.lane.b32.xlu1 %v325_v42, %s2096_s24 }
 0x47c   :  { %v291_v43 = vpop.permute.xlu1 %290 }
 0x47d   :  { %293 = vxpose.xlu0.b32.start.end [1/1] (short) (narrow) %v291_v43, 32 }
 0x480   :  { %v436_v50 = vpop.permute.xlu1 %435 }
 0x4b2   :  { %385 = vrot.lane.b32.xlu0 %v325_v42, %s2087_s22 }
 0x4fd   :  { %v309_v44 = vpop.trf.xlu0 }
 0x501   :  { %v310_v45 = vpop.trf.xlu0 }
 0x502   :  { %v326_v46 = vpack.c.bf16 %v310_v45, %v309_v44  ;;  %v1959_v44 = vld [vmem:[#allocation4 + $0x80] sm:$0xff]   ;;  %v1960_v45 = vld [vmem:[#allocation4 + $0x88] sm:$0xff]  }
 0x504   :  { %1789 = vmatpush3.bf16.msra.mxu0 %v326_v46  ;;  %v1961_v46 = vld [vmem:[#allocation4 + $0x90] sm:$0xff]  }
 0x505   :  { %v311_v47 = vpop.trf.xlu0  ;;  %1800 = vmatprep.subr.bf16.mxu0 %v2093_v0 }
 0x507   :  { %1791 = vmatmul.mubr.msk.bf16.vlgmr.msra.gmra.mrb[4].mxu0 %vm327_vm4, %v325_v42 }
 0x508   :  { %1802 = vmatprep.mubr.msk.bf16.mxu0 %vm2094_vm0, %v2093_v0 }
 0x509   :  { %v312_v48 = vpop.trf.xlu0 }
 0x50a   :  { %v434_v49 = vpack.c.bf16 %v312_v48, %v311_v47  ;;  %v1962_v47 = vld [vmem:[#allocation4 + $0x98] sm:$0xff]   ;;  %v1963_v48 = vld [vmem:[#allocation4 + $0xa0] sm:$0xff]  }
 0x50c   :  { %1801 = vmatpush3.bf16.msra.mxu0 %v434_v49  ;;  %v1964_v49 = vld [vmem:[#allocation4 + $0xa8] sm:$0xff]  }
 0x50d   :  { %1812 = vmatprep.subr.bf16.mxu0 %v2093_v0 }
 0x50f   :  { %1803 = vmatmul.mubr.msk.bf16.vlgmr.msra.gmra.mrb[8].mxu0 %vm327_vm4, %v436_v50  ;;  %v1965_v50 = vld [vmem:[#allocation4 + $0xb0] sm:$0xff]  }
 0x510   :  { %1816 = vmatprep.mubr.msk.bf16.mxu0 %vm2094_vm0, %v2093_v0  ;;  %1813 = vmatpush3.bf16.msra.mxu0 %v1957_v20 }
 0x511   :  { %1814 = vmatprep.subr.bf16.mxu0 %v2093_v0 }
 0x514   :  { %1815 = vmatpush3.bf16.msra.mxu0 %v1958_v21 }
 0x515   :  { %1828 = vmatprep.subr.bf16.mxu0 %v2093_v0 }
 0x524   :  { %v386_v51 = vpop.permute.xlu0 %385 }
 0x525   :  { %v392_v52 = vsel %vm390_vm5, %v386_v51, 0  ;;  %v1966_v51 = vld [vmem:[#allocation4 + $0xb8] sm:$0xff]  }
 0x526   :  { %1795 = vmatpush3.bf16.msra.mxu1 %v392_v52 }
 0x527   :  { %1806 = vmatprep.subr.bf16.mxu1 %v2093_v0 }
 0x5da   :  { %v365_v53 = vpop.f32.mrb[4].mxu0 }
 0x5db   :  { %v1792_v54 = vpop.f32.mrb[5].mxu0  ;;  %v372_v55 = vsel %vm371_vm6, %v365_v53, -inf }
 0x5dc   :  { %373 = vmax.xlane.f32.xlu1 %v372_v55  ;;  %v368_v56 = vpop.f32.mrb[6].mxu0 }
 0x5dd   :  { %v1793_v57 = vpop.f32.mrb[7].mxu0 }
 0x5e2   :  { %v474_v58 = vpop.f32.mrb[8].mxu0 }
 0x5e3   :  { %v1804_v59 = vpop.f32.mrb[9].mxu0  ;;  %v480_v60 = vsel %vm371_vm6, %v474_v58, -inf }
 0x5e4   :  { %481 = vmax.xlane.f32.xlu1 %v480_v60  ;;  %v477_v61 = vpop.f32.mrb[10].mxu0 }
 0x5e5   :  { %v1805_v62 = vpop.f32.mrb[11].mxu0  ;;  %v1635_v61 = vld [vmem:[#allocation6 + $0x6] ss:$0 sm:$0xff] }
 0x669   :  { %v374_v63 = vpop.xlane.xlu1 %373 }
 0x66a   :  { %v375_v1 = vsub.f32 %v365_v53, %v374_v63  ;;  %v1636_v63 = vld [vmem:[#allocation6 + $0x7] ss:$0 sm:$0xff] }
 0x66c   :  { %v376_v2 = vmul.f32 1.442695, %v375_v1 }
 0x66e   :  { %1992 = vpow2.f32 %v376_v2 }
 0x671   :  { %v482_v3 = vpop.xlane.xlu1 %481 }
 0x672   :  { %v483_v4 = vsub.f32 %v474_v58, %v482_v3 }
 0x674   :  { %v484_v5 = vmul.f32 1.442695, %v483_v4  ;;  %v1967_v4 = vld [vmem:[#allocation4 + $0xc0] sm:$0xff]  }
 0x676   :  { %1994 = vpow2.f32 %v484_v5  ;;  %v1968_v5 = vld [vmem:[#allocation4 + $0xc8] sm:$0xff]  }
 0x678   :  { %v1993_v6 = vpop.eup %1992 }
 0x679   :  { %v378_v7 = vsel %vm371_vm6, %v1993_v6, 0.0 }
 0x67a   :  { %379 = vadd.xlane.f32.xlu1 %v378_v7 }
 0x680   :  { %v1995_v8 = vpop.eup %1994 }
 0x681   :  { %v486_v9 = vsel %vm371_vm6, %v1995_v8, 0.0 }
 0x682   :  { %487 = vadd.xlane.f32.xlu1 %v486_v9 }
 0x693   :  { %492 = vrot.lane.b32.xlu1 %v325_v42, %s2097_s25 }
 0x707   :  { %v380_v10 = vpop.xlane.xlu1 %379 }
 0x708   :  { %1996 = vrcp.f32 %v380_v10 }
 0x70f   :  { %v488_v11 = vpop.xlane.xlu1 %487 }
 0x710   :  { %1998 = vrcp.f32 %v488_v11 }
 0x712   :  { %v1997_v12 = vpop.eup %1996 }
 0x713   :  { %v382_v13 = vmul.f32 %v1997_v12, %v1993_v6  ;;  %v493_v14 = vpop.permute.xlu1 %492  ;;  %v1637_v6 = vld [vmem:[#allocation6 + $0x8] ss:$0 sm:$0xff] }
 0x714   :  { %v498_v16 = vsel %vm390_vm5, %v493_v14, 0  ;;  %v1641_v14 = vld [vmem:[#allocation6 + $0x9] ss:$0 sm:$0xff] }
 0x715   :  { %v383_v15 = vpack.c.bf16 %v382_v13, %v382_v13 }
 0x717   :  { %1797 = vmatmul.mubr.msk.bf16.vlgmr.msra.gmra.mrb[8].mxu1 %vm371_vm6, %v383_v15 }
 0x718   :  { %1807 = vmatpush3.bf16.msra.mxu1 %v498_v16  ;;  %1808 = vmatprep.mubr.msk.bf16.mxu1 %vm2094_vm0, %v2093_v0 }
 0x719   :  { %1820 = vmatprep.subr.bf16.mxu1 %v2093_v0 }
 0x71a   :  { %v1999_v17 = vpop.eup %1998 }
 0x71b   :  { %v490_v18 = vmul.f32 %v1999_v17, %v1995_v8 }
 0x71d   :  { %v491_v19 = vpack.c.bf16 %v490_v18, %v490_v18 }
 0x71f   :  { %1809 = vmatmul.mubr.msk.bf16.vlgmr.msra.gmra.mrb[12].mxu1 %vm371_vm6, %v491_v19 }
 0x720   :  { %1824 = vmatprep.mubr.msk.bf16.mxu1 %vm2094_vm0, %v2093_v0  ;;  %1821 = vmatpush3.bf16.msra.mxu1 %v1959_v44 }
 0x721   :  { %1822 = vmatprep.subr.bf16.mxu1 %v2093_v0 }
 0x724   :  { %1823 = vmatpush3.bf16.msra.mxu1 %v1960_v45 }
 0x725   :  { %1848 = vmatprep.subr.bf16.mxu1 %v2093_v0 }
 0x7ea   :  { %v428_v22 = vpop.f32.mrb[8].mxu1 }
 0x7eb   :  { %v1798_v23 = vpop.f32.mrb[9].mxu1 }
 0x7ec   :  { %v431_v24 = vpop.f32.mrb[10].mxu1 }
 0x7ed   :  { %v1799_v25 = vpop.f32.mrb[11].mxu1  ;;  %v1969_v24 = vld [vmem:[#allocation4 + $0xd0] sm:$0xff]  }
 0x7ee   :  { %v1970_v25 = vld [vmem:[#allocation4 + $0xd8] sm:$0xff]  }
 0x7f2   :  { %v534_v26 = vpop.f32.mrb[12].mxu1 }
 0x7f3   :  { %541 = vrot.lane.b32.xlu1 %v534_v26, %s2098_s26  ;;  %v1810_v27 = vpop.f32.mrb[13].mxu1 }
 0x7f4   :  { %v537_v28 = vpop.f32.mrb[14].mxu1 }
 0x7f5   :  { %v1811_v29 = vpop.f32.mrb[15].mxu1 }
 0x865   :  { %v542_v30 = vpop.permute.xlu1 %541 }
 0x866   :  { %v544_v31 = vsel %vm327_vm4, %v428_v22, %v542_v30 }
 0x867   :  { %v549_v32 = vpack.c.bf16 %v544_v31, %v544_v31 }
 0x869   :  { %1817 = vmatmul.mubr.msk.bf16.vlgmr.msra.gmra.mrb[12].mxu0 %vm212_vm3, %v549_v32 }
 0x86a   :  { %1844 = vmatprep.mubr.msk.bf16.mxu0 %vm2094_vm0, %v2093_v0  ;;  %1829 = vmatpush3.bf16.msra.mxu0 %v1961_v46 }
 0x86b   :  { %1830 = vmatprep.subr.bf16.mxu0 %v2093_v0 }
 0x86e   :  { %1831 = vmatpush3.bf16.msra.mxu0 %v1962_v47 }
 0x86f   :  { %1832 = vmatprep.subr.bf16.mxu0 %v2093_v0 }
 0x872   :  { %1833 = vmatpush3.bf16.msra.mxu0 %v1963_v48 }
 0x873   :  { %1834 = vmatprep.subr.bf16.mxu0 %v2093_v0 }
 0x876   :  { %1835 = vmatpush3.bf16.msra.mxu0 %v1964_v49 }
 0x877   :  { %1836 = vmatprep.subr.bf16.mxu0 %v2093_v0 }
 0x87a   :  { %1837 = vmatpush3.bf16.msra.mxu0 %v1965_v50 }
 0x87b   :  { %1838 = vmatprep.subr.bf16.mxu0 %v2093_v0 }
 0x87e   :  { %1839 = vmatpush3.bf16.msra.mxu0 %v1966_v51 }
 0x87f   :  { %1840 = vmatprep.subr.bf16.mxu0 %v2093_v0 }
 0x882   :  { %1841 = vmatpush3.bf16.msra.mxu0 %v1967_v4 }
 0x883   :  { %1842 = vmatprep.subr.bf16.mxu0 %v2093_v0 }
 0x886   :  { %1843 = vmatpush3.bf16.msra.mxu0 %v1968_v5 }
 0x887   :  { %1874 = vmatprep.subr.bf16.mxu0 %v2093_v0 }
 0x93c   :  { %v604_v35 = vpop.f32.mrb[12].mxu0 }
 0x93d   :  { %v605_v36 = vadd.f32 %v1631_v33, %v604_v35  ;;  %v1818_v37 = vpop.f32.mrb[13].mxu0 }
 0x93e   :  { %v607_v38 = vpop.f32.mrb[14].mxu0 }
 0x93f   :  { %v610_v39 = vadd.f32 %v605_v36, %v2180_v34  ;;  %v1819_v40 = vpop.f32.mrb[15].mxu0  ;;  %v1650_v36 = vld [vmem:[#allocation6 + $0xa] ss:$0 sm:$0xff]  ;;  %v1651_v38 = vld [vmem:[#allocation6 + $0xb] ss:$0 sm:$0xff] }
 0x941   :  { %v613_v41 = vsel %vm212_vm3, %v610_v39, 0.0  ;;  %v618_v42 = vmul.f32 %v610_v39, %v610_v39 }
 0x942   :  { %614 = vadd.xlane.f32.xlu1 %v613_v41 }
 0x943   :  { %v619_v43 = vsel %vm212_vm3, %v618_v42, 0.0  ;;  %v1652_v42 = vld [vmem:[#allocation6 + $0xc] ss:$0 sm:$0xff] }
 0x944   :  { %620 = vadd.xlane.f32.xlu0 %v619_v43 }
 0x9cf   :  { %v615_v52 = vpop.xlane.xlu1 %614 }
 0x9d0   :  { %v617_v53 = vmul.f32 0.03125, %v615_v52 }
 0x9d1   :  { %v621_v54 = vpop.xlane.xlu0 %620 }
 0x9d2   :  { %v623_v55 = vmul.f32 %v617_v53, %v617_v53  ;;  %v622_v56 = vmul.f32 0.03125, %v621_v54  ;;  %v625_v59 = vsub.f32 %v610_v39, %v617_v53 }
 0x9d4   :  { %v624_v57 = vsub.f32 %v622_v56, %v623_v55 }
 0x9d6   :  { %v626_v58 = vadd.f32 1e-05, %v624_v57 }
 0x9d8   :  { %2000 = vrsqrt.f32 %v626_v58 }
 0x9e2   :  { %v2001_v60 = vpop.eup %2000 }
 0x9e3   :  { %v628_v62 = vmul.f32 %v2001_v60, %v625_v59 }
 0x9e5   :  { %v633_v1 = vmul.f32 %v1635_v61, %v628_v62 }
 0x9e7   :  { %v638_v2 = vadd.f32 %v1636_v63, %v633_v1 }
 0x9e9   :  { %v643_v3 = vpack.c.bf16 %v638_v2, %v638_v2 }
 0x9eb   :  { %1825 = vmatmul.mubr.msk.bf16.vlgmr.msra.gmra.mrb[16].mxu1 %vm212_vm3, %v643_v3 }
 0x9ec   :  { %1852 = vmatprep.mubr.msk.bf16.mxu1 %vm2094_vm0, %v2093_v0  ;;  %1849 = vmatpush3.bf16.msra.mxu1 %v1969_v24 }
 0x9ed   :  { %1850 = vmatprep.subr.bf16.mxu1 %v2093_v0 }
 0x9f0   :  { %1851 = vmatpush3.bf16.msra.mxu1 %v1970_v25 }
 0x9f1   :  { %1856 = vmatprep.subr.bf16.mxu1 %v2093_v0 }
 0xabe   :  { %v698_v7 = vpop.f32.mrb[16].mxu1 }
 0xabf   :  { %v699_v8 = vadd.f32 %v1637_v6, %v698_v7  ;;  %v1826_v9 = vpop.f32.mrb[17].mxu1 }
 0xac0   :  { %v701_v10 = vpop.f32.mrb[18].mxu1 }
 0xac1   :  { %v704_v11 = vmax.f32 %v699_v8, 0.0  ;;  %v1827_v12 = vpop.f32.mrb[19].mxu1 }
 0xac3   :  { %v721_v13 = vpack.c.bf16 %v704_v11, %v704_v11 }
 0xac5   :  { %1845 = vmatmul.mubr.bf16.vlgmr.msra.gmra.mrb[16].mxu0 %v721_v13 }
 0xac6   :  { %1876 = vmatprep.mubr.msk.bf16.mxu0 %vm2094_vm0, %v2093_v0 }
 0xb98   :  { %v809_v15 = vpop.f32.mrb[16].mxu0 }
 0xb99   :  { %v810_v16 = vadd.f32 %v1641_v14, %v809_v15  ;;  %v1846_v17 = vpop.f32.mrb[17].mxu0 }
 0xb9a   :  { %v812_v18 = vpop.f32.mrb[18].mxu0 }
 0xb9b   :  { %v815_v19 = vadd.f32 %v810_v16, %v638_v2  ;;  %v1847_v20 = vpop.f32.mrb[19].mxu0 }
 0xb9d   :  { %v818_v21 = vsel %vm212_vm3, %v815_v19, 0.0  ;;  %v822_v22 = vmul.f32 %v815_v19, %v815_v19 }
 0xb9e   :  { %819 = vadd.xlane.f32.xlu1 %v818_v21 }
 0xb9f   :  { %v823_v23 = vsel %vm212_vm3, %v822_v22, 0.0 }
 0xba2   :  { %824 = vadd.xlane.f32.xlu1 %v823_v23 }
 0xc2b   :  { %v820_v26 = vpop.xlane.xlu1 %819 }
 0xc2c   :  { %v821_v27 = vmul.f32 0.03125, %v820_v26 }
 0xc2e   :  { %v827_v29 = vmul.f32 %v821_v27, %v821_v27  ;;  %v829_v33 = vsub.f32 %v815_v19, %v821_v27 }
 0xc2f   :  { %v825_v28 = vpop.xlane.xlu1 %824 }
 0xc30   :  { %v826_v30 = vmul.f32 0.03125, %v825_v28 }
 0xc32   :  { %v828_v31 = vsub.f32 %v826_v30, %v827_v29  ;;  %v1971_v30 = vld [vmem:[#allocation4 + $0xe0] sm:$0xff]  }
 0xc34   :  { %v830_v32 = vadd.f32 1e-05, %v828_v31  ;;  %v1972_v31 = vld [vmem:[#allocation4 + $0xe8] sm:$0xff]  }
 0xc36   :  { %2002 = vrsqrt.f32 %v830_v32 }
 0xc40   :  { %v2003_v35 = vpop.eup %2002 }
 0xc41   :  { %v832_v37 = vmul.f32 %v2003_v35, %v829_v33 }
 0xc43   :  { %v837_v39 = vmul.f32 %v1650_v36, %v832_v37 }
 0xc45   :  { %v2242_v40 = vadd.f32 %v1651_v38, %v837_v39 }
 0xc47   :  { %v847_v41 = vpack.c.bf16 %v2242_v40, %v2242_v40 }
 0xc49   :  { %1853 = vmatmul.mubr.msk.bf16.vlgmr.msra.gmra.mrb[20].mxu1 %vm212_vm3, %v847_v41  ;;  %v1660_v41 = vld [vmem:[#allocation6 + $0xd] ss:$0 sm:$0xff] }
 0xc4a   :  { %1858 = vmatprep.mubr.msk.bf16.mxu1 %vm2094_vm0, %v2093_v0 }
 0xd1c   :  { %v902_v43 = vpop.f32.mrb[20].mxu1 }
 0xd1d   :  { %v903_v44 = vadd.f32 %v1652_v42, %v902_v43  ;;  %v1854_v45 = vpop.f32.mrb[21].mxu1 }
 0xd1e   :  { %v905_v46 = vpop.f32.mrb[22].mxu1 }
 0xd1f   :  { %909 = vrot.lane.b32.xlu1 %v903_v44, %s2095_s2  ;;  %v1855_v47 = vpop.f32.mrb[23].mxu1  ;;  %v944_v49 = vpack.c.bf16 %v903_v44, %v903_v44 }
 0xd91   :  { %v910_v48 = vpop.permute.xlu1 %909 }
 0xd92   :  { %912 = vxpose.xlu0.b32.start.end [1/1] (short) (narrow) %v910_v48, 32 }
 0xdc7   :  { %1051 = vrot.lane.b32.xlu0 %v944_v49, %s2096_s24 }
 0xdcb   :  { %1108 = vrot.lane.b32.xlu0 %v944_v49, %s2097_s25 }
 0xe12   :  { %v928_v50 = vpop.trf.xlu0 }
 0xe16   :  { %v929_v51 = vpop.trf.xlu0 }
 0xe17   :  { %v945_v52 = vpack.c.bf16 %v929_v51, %v928_v50  ;;  %v1973_v51 = vld [vmem:[#allocation4 + $0xf0] sm:$0xff]  }
 0xe19   :  { %1857 = vmatpush3.bf16.msra.mxu1 %v945_v52  ;;  %v1974_v52 = vld [vmem:[#allocation4 + $0xf8] sm:$0xff]  }
 0xe1a   :  { %v930_v53 = vpop.trf.xlu0  ;;  %1862 = vmatprep.subr.bf16.mxu1 %v2093_v0 }
 0xe1c   :  { %1859 = vmatmul.mubr.msk.bf16.vlgmr.msra.gmra.mrb[24].mxu1 %vm327_vm4, %v944_v49 }
 0xe1d   :  { %1864 = vmatprep.mubr.msk.bf16.mxu1 %vm2094_vm0, %v2093_v0 }
 0xe1e   :  { %v931_v54 = vpop.trf.xlu0 }
 0xe1f   :  { %v1050_v55 = vpack.c.bf16 %v931_v54, %v930_v53  ;;  %v1975_v53 = vld [vmem:[#allocation4 + $0x100] sm:$0xff]   ;;  %v1976_v54 = vld [vmem:[#allocation4 + $0x108] sm:$0xff]  }
 0xe39   :  { %v1052_v56 = vpop.permute.xlu0 %1051 }
 0xe3d   :  { %v1109_v57 = vpop.permute.xlu0 %1108 }
 0xe3e   :  { %v1114_v58 = vsel %vm390_vm5, %v1109_v57, 0  ;;  %v1980_v57 = vld [vmem:[#allocation4 + $0x128] sm:$0xff]  }
 0xe3f   :  { %1875 = vmatpush3.bf16.msra.mxu0 %v1114_v58 }
 0xe40   :  { %1888 = vmatprep.subr.bf16.mxu0 %v2093_v0 }
 0xeef   :  { %v983_v59 = vpop.f32.mrb[24].mxu1 }
 0xef0   :  { %v1860_v60 = vpop.f32.mrb[25].mxu1  ;;  %v989_v61 = vsel %vm371_vm6, %v983_v59, -inf }
 0xef1   :  { %990 = vmax.xlane.f32.xlu1 %v989_v61  ;;  %v986_v62 = vpop.f32.mrb[26].mxu1 }
 0xef2   :  { %v1861_v63 = vpop.f32.mrb[27].mxu1 }
 0xf7e   :  { %v991_v1 = vpop.xlane.xlu1 %990 }
 0xf7f   :  { %v992_v2 = vsub.f32 %v983_v59, %v991_v1 }
 0xf81   :  { %v993_v3 = vmul.f32 1.442695, %v992_v2 }
 0xf83   :  { %2004 = vpow2.f32 %v993_v3 }
 0xf8d   :  { %v2005_v4 = vpop.eup %2004 }
 0xf8e   :  { %v995_v5 = vsel %vm371_vm6, %v2005_v4, 0.0 }
 0xf8f   :  { %996 = vadd.xlane.f32.xlu1 %v995_v5 }
 0xfa0   :  { %1002 = vrot.lane.b32.xlu1 %v944_v49, %s2087_s22  ;;  %s2099_s22 = smov 32  }
0x101c   :  { %v997_v6 = vpop.xlane.xlu1 %996 }
0x101d   :  { %2006 = vrcp.f32 %v997_v6  ;;  %v1665_v6 = vld [vmem:[#allocation6 + $0xf] ss:$0 sm:$0xff] }
0x1020   :  { %v1003_v7 = vpop.permute.xlu1 %1002 }
0x1021   :  { %v1008_v8 = vsel %vm390_vm5, %v1003_v7, 0 }
0x1022   :  { %1863 = vmatpush3.bf16.msra.mxu1 %v1008_v8 }
0x1023   :  { %1868 = vmatprep.subr.bf16.mxu1 %v2093_v0 }
0x1027   :  { %v2007_v9 = vpop.eup %2006 }
0x1028   :  { %v999_v10 = vmul.f32 %v2007_v9, %v2005_v4  ;;  %v1664_v4 = vld [vmem:[#allocation6 + $0xe] ss:$0 sm:$0xff] }
0x102a   :  { %v1000_v11 = vpack.c.bf16 %v999_v10, %v999_v10  ;;  %v1981_v10 = vld [vmem:[#allocation4 + $0x130] sm:$0xff]  }
0x102c   :  { %1865 = vmatmul.mubr.msk.bf16.vlgmr.msra.gmra.mrb[28].mxu1 %vm371_vm6, %v1000_v11  ;;  %v1982_v11 = vld [vmem:[#allocation4 + $0x138] sm:$0xff]  }
0x102d   :  { %1869 = vmatpush3.bf16.msra.mxu1 %v1050_v55  ;;  %1870 = vmatprep.mubr.msk.bf16.mxu1 %vm2094_vm0, %v2093_v0  ;;  %v1978_v55 = vld [vmem:[#allocation4 + $0x118] sm:$0xff]  }
0x102e   :  { %1880 = vmatprep.subr.bf16.mxu1 %v2093_v0 }
0x1034   :  { %1871 = vmatmul.mubr.msk.bf16.vlgmr.msra.gmra.mrb[32].mxu1 %vm327_vm4, %v1052_v56  ;;  %v1979_v56 = vld [vmem:[#allocation4 + $0x120] sm:$0xff]  }
0x1035   :  { %1884 = vmatprep.mubr.msk.bf16.mxu1 %vm2094_vm0, %v2093_v0  ;;  %1881 = vmatpush3.bf16.msra.mxu1 %v1971_v30  ;;  %v1983_v30 = vld [vmem:[#allocation4 + $0x38] sm:$0xff]  }
0x1036   :  { %1882 = vmatprep.subr.bf16.mxu1 %v2093_v0 }
0x1039   :  { %1883 = vmatpush3.bf16.msra.mxu1 %v1972_v31  ;;  %v1984_v31 = vld [vmem:[#allocation4 + $0x40] sm:$0xff]  }
0x103a   :  { %1896 = vmatprep.subr.bf16.mxu1 %v2093_v0 }
0x10ff   :  { %v1044_v12 = vpop.f32.mrb[28].mxu1 }
0x1100   :  { %v1866_v13 = vpop.f32.mrb[29].mxu1 }
0x1101   :  { %v1047_v14 = vpop.f32.mrb[30].mxu1 }
0x1102   :  { %v1867_v15 = vpop.f32.mrb[31].mxu1 }
0x1107   :  { %v1090_v16 = vpop.f32.mrb[32].mxu1 }
0x1108   :  { %v1872_v17 = vpop.f32.mrb[33].mxu1  ;;  %v1096_v18 = vsel %vm371_vm6, %v1090_v16, -inf }
0x1109   :  { %1097 = vmax.xlane.f32.xlu1 %v1096_v18  ;;  %v1093_v19 = vpop.f32.mrb[34].mxu1 }
0x110a   :  { %v1873_v20 = vpop.f32.mrb[35].mxu1 }
0x110b   :  { %v1670_v20 = vld [vmem:[#allocation6 + $0x11] ss:$0 sm:$0xff] }
0x1196   :  { %v1098_v21 = vpop.xlane.xlu1 %1097 }
0x1197   :  { %v1099_v22 = vsub.f32 %v1090_v16, %v1098_v21 }
0x1199   :  { %v1100_v23 = vmul.f32 1.442695, %v1099_v22 }
0x119b   :  { %2008 = vpow2.f32 %v1100_v23 }
0x11a5   :  { %v2009_v24 = vpop.eup %2008 }
0x11a6   :  { %v1102_v25 = vsel %vm371_vm6, %v2009_v24, 0.0 }
0x11a7   :  { %1103 = vadd.xlane.f32.xlu1 %v1102_v25 }
0x1234   :  { %v1104_v26 = vpop.xlane.xlu1 %1103 }
0x1235   :  { %2010 = vrcp.f32 %v1104_v26 }
0x123f   :  { %v2011_v27 = vpop.eup %2010 }
0x1240   :  { %v1106_v28 = vmul.f32 %v2011_v27, %v2009_v24 }
0x1242   :  { %v1107_v29 = vpack.c.bf16 %v1106_v28, %v1106_v28 }
0x1244   :  { %1877 = vmatmul.mubr.msk.bf16.vlgmr.msra.gmra.mrb[20].mxu0 %vm371_vm6, %v1107_v29 }
0x1245   :  { %1892 = vmatprep.mubr.msk.bf16.mxu0 %vm2094_vm0, %v2093_v0  ;;  %1889 = vmatpush3.bf16.msra.mxu0 %v1973_v51  ;;  %v1987_v51 = vld [vmem:[#allocation4 + $0x58] sm:$0xff]  }
0x1246   :  { %1890 = vmatprep.subr.bf16.mxu0 %v2093_v0 }
0x1249   :  { %1891 = vmatpush3.bf16.msra.mxu0 %v1974_v52  ;;  %v1681_v52 = vld [vmem:[#allocation6 + $0x2] ss:$0 sm:$0xff] }
0x124a   :  { %1916 = vmatprep.subr.bf16.mxu0 %v2093_v0 }
0x1317   :  { %v1150_v32 = vpop.f32.mrb[20].mxu0 }
0x1318   :  { %1157 = vrot.lane.b32.xlu1 %v1150_v32, %s2098_s26  ;;  %v1878_v33 = vpop.f32.mrb[21].mxu0 }
0x1319   :  { %v1153_v35 = vpop.f32.mrb[22].mxu0 }
0x131a   :  { %v1879_v36 = vpop.f32.mrb[23].mxu0 }
0x138a   :  { %v1158_v37 = vpop.permute.xlu1 %1157 }
0x138b   :  { %v1160_v38 = vsel %vm327_vm4, %v1044_v12, %v1158_v37  ;;  %v1666_v12 = vld [vmem:[#allocation6 + $0x10] ss:$0 sm:$0xff] }
0x138c   :  { %v1165_v39 = vpack.c.bf16 %v1160_v38, %v1160_v38 }
0x138e   :  { %1885 = vmatmul.mubr.msk.bf16.vlgmr.msra.gmra.mrb[36].mxu1 %vm212_vm3, %v1165_v39 }
0x138f   :  { %1912 = vmatprep.mubr.msk.bf16.mxu1 %vm2094_vm0, %v2093_v0  ;;  %1897 = vmatpush3.bf16.msra.mxu1 %v1975_v53 }
0x1390   :  { %1898 = vmatprep.subr.bf16.mxu1 %v2093_v0 }
0x1393   :  { %1899 = vmatpush3.bf16.msra.mxu1 %v1976_v54 }
0x1394   :  { %1900 = vmatprep.subr.bf16.mxu1 %v2093_v0 }
0x1461   :  { %v1220_v42 = vpop.f32.mrb[36].mxu1 }
0x1462   :  { %v1221_v43 = vadd.f32 %v1660_v41, %v1220_v42  ;;  %v1886_v44 = vpop.f32.mrb[37].mxu1 }
0x1463   :  { %v1223_v45 = vpop.f32.mrb[38].mxu1 }
0x1464   :  { %v1226_v46 = vadd.f32 %v1221_v43, %v2242_v40  ;;  %v1887_v47 = vpop.f32.mrb[39].mxu1  ;;  %v1977_v40 = vld [vmem:[#allocation4 + $0x110] sm:$0xff]  }
0x1465   :  { %1901 = vmatpush3.bf16.msra.mxu1 %v1977_v40  ;;  %v1679_v43 = vld [vmem:[#allocation6 + $0x12] ss:$0 sm:$0xff]  ;;  %v1680_v45 = vld [vmem:[#allocation6 + $0x13] ss:$0 sm:$0xff] }
0x1466   :  { %v1229_v48 = vsel %vm212_vm3, %v1226_v46, 0.0  ;;  %v1233_v49 = vmul.f32 %v1226_v46, %v1226_v46  ;;  %1902 = vmatprep.subr.bf16.mxu1 %v2093_v0 }
0x1467   :  { %1230 = vadd.xlane.f32.xlu0 %v1229_v48  ;;  %v1985_v48 = vld [vmem:[#allocation4 + $0x48] sm:$0xff]  }
0x1468   :  { %v1234_v50 = vsel %vm212_vm3, %v1233_v49, 0.0 }
0x1469   :  { %1235 = vadd.xlane.f32.xlu1 %v1234_v50  ;;  %1903 = vmatpush3.bf16.msra.mxu1 %v1978_v55  ;;  %v1986_v50 = vld [vmem:[#allocation4 + $0x50] sm:$0xff]  }
0x146a   :  { %1904 = vmatprep.subr.bf16.mxu1 %v2093_v0 }
0x146d   :  { %1905 = vmatpush3.bf16.msra.mxu1 %v1979_v56 }
0x146e   :  { %1906 = vmatprep.subr.bf16.mxu1 %v2093_v0 }
0x1471   :  { %1907 = vmatpush3.bf16.msra.mxu1 %v1980_v57 }
0x1472   :  { %1908 = vmatprep.subr.bf16.mxu1 %v2093_v0 }
0x1475   :  { %1909 = vmatpush3.bf16.msra.mxu1 %v1981_v10 }
0x1476   :  { %1910 = vmatprep.subr.bf16.mxu1 %v2093_v0 }
0x1479   :  { %1911 = vmatpush3.bf16.msra.mxu1 %v1982_v11 }
0x14f4   :  { %v1231_v58 = vpop.xlane.xlu0 %1230 }
0x14f5   :  { %v1232_v59 = vmul.f32 0.03125, %v1231_v58 }
0x14f6   :  { %v1236_v60 = vpop.xlane.xlu1 %1235 }
0x14f7   :  { %v1238_v61 = vmul.f32 %v1232_v59, %v1232_v59  ;;  %v1237_v62 = vmul.f32 0.03125, %v1236_v60  ;;  %v1240_v2 = vsub.f32 %v1226_v46, %v1232_v59  ;;  %v1685_v59 = vld [vmem:[#allocation6 + $0x3] ss:$0 sm:$0xff] }
0x14f9   :  { %v1239_v63 = vsub.f32 %v1237_v62, %v1238_v61 }
0x14fb   :  { %v1241_v1 = vadd.f32 1e-05, %v1239_v63 }
0x14fd   :  { %2012 = vrsqrt.f32 %v1241_v1 }
0x1507   :  { %v2013_v3 = vpop.eup %2012 }
0x1508   :  { %v1243_v5 = vmul.f32 %v2013_v3, %v1240_v2 }
0x150a   :  { %v1248_v7 = vmul.f32 %v1664_v4, %v1243_v5 }
0x150c   :  { %v1253_v8 = vadd.f32 %v1665_v6, %v1248_v7 }
0x150e   :  { %v1258_v9 = vpack.c.bf16 %v1253_v8, %v1253_v8 }
0x1510   :  { %1893 = vmatmul.mubr.msk.bf16.vlgmr.msra.gmra.mrb[24].mxu0 %vm212_vm3, %v1258_v9 }
0x1511   :  { %1920 = vmatprep.mubr.msk.bf16.mxu0 %vm2094_vm0, %v2093_v0  ;;  %1917 = vmatpush3.bf16.msra.mxu0 %v1983_v30 }
0x1512   :  { %1918 = vmatprep.subr.bf16.mxu0 %v2093_v0 }
0x1515   :  { %1919 = vmatpush3.bf16.msra.mxu0 %v1984_v31 }
0x1516   :  { %1924 = vmatprep.subr.bf16.mxu0 %v2093_v0 }
0x15e3   :  { %v1313_v13 = vpop.f32.mrb[24].mxu0 }
0x15e4   :  { %v1314_v14 = vadd.f32 %v1666_v12, %v1313_v13  ;;  %v1894_v15 = vpop.f32.mrb[25].mxu0 }
0x15e5   :  { %v1316_v16 = vpop.f32.mrb[26].mxu0 }
0x15e6   :  { %v1319_v17 = vmax.f32 %v1314_v14, 0.0  ;;  %v1895_v18 = vpop.f32.mrb[27].mxu0 }
0x15e8   :  { %v1336_v19 = vpack.c.bf16 %v1319_v17, %v1319_v17 }
0x15ea   :  { %1913 = vmatmul.mubr.bf16.vlgmr.msra.gmra.mrb[40].mxu1 %v1336_v19 }
0x16bd   :  { %v1424_v21 = vpop.f32.mrb[40].mxu1 }
0x16be   :  { %v1425_v22 = vadd.f32 %v1670_v20, %v1424_v21  ;;  %v1914_v23 = vpop.f32.mrb[41].mxu1 }
0x16bf   :  { %v1427_v24 = vpop.f32.mrb[42].mxu1 }
0x16c0   :  { %v1430_v25 = vadd.f32 %v1425_v22, %v1253_v8  ;;  %v1915_v26 = vpop.f32.mrb[43].mxu1 }
0x16c2   :  { %v1433_v27 = vsel %vm212_vm3, %v1430_v25, 0.0  ;;  %v1437_v28 = vmul.f32 %v1430_v25, %v1430_v25 }
0x16c3   :  { %1434 = vadd.xlane.f32.xlu0 %v1433_v27 }
0x16c4   :  { %v1438_v29 = vsel %vm212_vm3, %v1437_v28, 0.0 }
0x16c7   :  { %1439 = vadd.xlane.f32.xlu0 %v1438_v29 }
0x1750   :  { %v1435_v32 = vpop.xlane.xlu0 %1434 }
0x1751   :  { %v1436_v33 = vmul.f32 0.03125, %v1435_v32 }
0x1753   :  { %v1442_v36 = vmul.f32 %v1436_v33, %v1436_v33  ;;  %v1444_v41 = vsub.f32 %v1430_v25, %v1436_v33 }
0x1754   :  { %v1440_v35 = vpop.xlane.xlu0 %1439 }
0x1755   :  { %v1441_v37 = vmul.f32 0.03125, %v1440_v35 }
0x1757   :  { %v1443_v38 = vsub.f32 %v1441_v37, %v1442_v36 }
0x1759   :  { %v1445_v39 = vadd.f32 1e-05, %v1443_v38 }
0x175b   :  { %2014 = vrsqrt.f32 %v1445_v39 }
0x1765   :  { %v2015_v42 = vpop.eup %2014 }
0x1766   :  { %v1447_v44 = vmul.f32 %v2015_v42, %v1444_v41 }
0x1768   :  { %v1452_v46 = vmul.f32 %v1679_v43, %v1447_v44 }
0x176a   :  { %v1457_v47 = vadd.f32 %v1680_v45, %v1452_v46 }
0x176c   :  { %v1462_v49 = vpack.c.bf16 %v1457_v47, %v1457_v47 }
0x176e   :  { %1921 = vmatmul.mubr.msk.bf16.vlgmr.msra.gmra.mrb[28].mxu0 %vm212_vm3, %v1462_v49 }
0x176f   :  { %1925 = vmatpush3.bf16.msra.mxu0 %v1985_v48  ;;  %1930 = vmatprep.mubr.msk.bf16.mxu0 %vm2094_vm0, %v2093_v0 }
0x1770   :  { %1926 = vmatprep.subr.bf16.mxu0 %v2093_v0 }
0x1773   :  { %1927 = vmatpush3.bf16.msra.mxu0 %v1986_v50 }
0x1774   :  { %1928 = vmatprep.subr.bf16.mxu0 %v2093_v0 }
0x1777   :  { %1929 = vmatpush3.bf16.msra.mxu0 %v1987_v51 }
0x1841   :  { %v1517_v53 = vpop.f32.mrb[28].mxu0 }
0x1842   :  { %v1518_v54 = vadd.f32 %v1681_v52, %v1517_v53  ;;  %v1922_v40 = vpop.f32.mrb[29].mxu0 }
0x1843   :  { %v1520_v55 = vpop.f32.mrb[30].mxu0 }
0x1844   :  { %v1523_v56 = vmax.f32 %v1518_v54, 0.0  ;;  %v1923_v57 = vpop.f32.mrb[31].mxu0 }
0x1846   :  { %v1530_v58 = vpack.c.bf16 %v1523_v56, %v1523_v56 }
0x1848   :  { %1931 = vmatmul.mubr.msk.bf16.vlgmr.msra.gmra.mrb[32].mxu0 %vm168_vm2, %v1530_v58 }
0x191b   :  { %v1591_v60 = vpop.f32.mrb[32].mxu0 }
0x191c   :  { %v1592_v61 = vadd.f32 %v1685_v59, %v1591_v60  ;;  %v1932_v62 = vpop.f32.mrb[33].mxu0 }
0x191d   :  { %v1594_v63 = vpop.f32.mrb[34].mxu0 }
0x191e   :  { %v1597_v1 = vmax.f32 %v1592_v61, 0.0  ;;  %v1933_v2 = vpop.f32.mrb[35].mxu0 }
0x1920   :  { %1599 = vrot.lane.b32.xlu0 %v1597_v1, %s2099_s22 }
0x1992   :  { %v1600_v0 = vpop.permute.xlu0 %1599 }
0x1993   :  { %v1602_v3 = vsel %vm212_vm3, %v2180_v34, %v1600_v0 }
0x1994   :  { %v1604_v4 = vsel %vm1603_vm7, %v1602_v3, 0.0 }
0x1995   :  { %1605 = vst [vmem:[%s2315_s3] sm:$0xff] %v1604_v4 }
0x1996   :  { %1610 = vsyncpa [#allocation3], 1 }
0x1997   :  { %1611 = vsyncpa [#allocation5], 1 }

</bundles_post_ra>
